<compile_context>
chip_gen: v6e
topology: v6e:2x2x1
jax: 0.10.0
libtpu: 0.0.40
codegen_flags: <defaults>
</compile_context>

<pallas_src>
import functools

import jax
import jax.numpy as jnp
from jax import lax
from jax.experimental import pallas as pl
from jax.experimental.pallas import tpu as pltpu

_EPS = 1e-5


def _resblock_kernel(x_ref, w_ref, o_ref):
    # x_ref: (Bt, 9*C, H*W)  bf16 im2col of the reflection-padded input
    # w_ref: (C, 9*C)        bf16 conv weight, K index = (kh*3+kw)*C + c_in
    # o_ref: (Bt, C, H*W)    bf16 output (lane-dense last axis)
    w = w_ref[...]
    inv_n = 1.0 / o_ref.shape[-1]
    # Static unroll over the (small) batch tile; each image is one fused
    # MXU matmul with K = 9*C and f32 accumulation.
    for b in range(o_ref.shape[0]):
        acc = jnp.dot(w, x_ref[b], preferred_element_type=jnp.float32)  # (C, H*W) f32

        # InstanceNorm2d (affine=False, biased variance, eps=1e-5):
        # one-pass per-channel sum / sum-of-squares stats (XLU reductions),
        # instead of re-reading acc for mean then variance.
        s1 = jnp.sum(acc, axis=-1, keepdims=True) * inv_n            # E[x]
        s2 = jnp.sum(acc * acc, axis=-1, keepdims=True) * inv_n      # E[x^2]
        var = jnp.maximum(s2 - s1 * s1, 0.0)
        y = (acc - s1) * lax.rsqrt(var + _EPS)

        # ReLU + lane-dense store (H*W is a multiple of 128 -> unmasked vst).
        o_ref[b] = jnp.maximum(y, 0.0).astype(o_ref.dtype)


def resnet_block_forward(x_nchw, weight, bias=None, *, batch_tile=None):
    """One ResnetBlock forward.

    x_nchw: (B, C, H, W); weight: (C, C, 3, 3); bias: (C,) (accepted for API
    fidelity but unused -- it is exactly cancelled by affine-free InstanceNorm).
    Returns (B, C, H, W) in bfloat16.
    """
    del bias  # mathematically cancelled by the InstanceNorm mean subtraction
    B, C, H, W = x_nchw.shape
    HW = H * W
    assert weight.shape == (C, C, 3, 3)
    assert C % 16 == 0, "C (sublane tile) should be a multiple of 16 for bf16"
    assert HW % 128 == 0, "H*W must be a multiple of 128 for lane-dense blocks"

    # --- XLA glue: reflection pad + im2col in bf16 (halves HBM/VMEM traffic) ---
    xpad = jnp.pad(x_nchw.astype(jnp.bfloat16),
                   ((0, 0), (0, 0), (1, 1), (1, 1)), mode="reflect")
    taps = [xpad[:, :, kh:kh + H, kw:kw + W] for kh in range(3) for kw in range(3)]
    x_col = jnp.stack(taps, axis=1).reshape(B, 9 * C, HW)            # (B, 9C, HW)

    # weight (C_out, C_in, 3, 3) -> (C_out, (kh*3+kw)*C_in + c_in): matches x_col K order.
    w_mat = jnp.transpose(weight, (0, 2, 3, 1)).reshape(C, 9 * C).astype(jnp.bfloat16)

    Bt = B if batch_tile is None else batch_tile
    assert B % Bt == 0

    out = pl.pallas_call(
        _resblock_kernel,
        out_shape=jax.ShapeDtypeStruct((B, C, HW), jnp.bfloat16),
        grid_spec=pltpu.PrefetchScalarGridSpec(
            num_scalar_prefetch=0,
            grid=(B // Bt,),
            in_specs=[
                pl.BlockSpec((Bt, 9 * C, HW), lambda b: (b, 0, 0)),
                # Grid-invariant weight (constant index_map); no bias input at all.
                pl.BlockSpec((C, 9 * C), lambda b: (0, 0)),
            ],
            out_specs=pl.BlockSpec((Bt, C, HW), lambda b: (b, 0, 0)),
        ),
        compiler_params=pltpu.CompilerParams(
            dimension_semantics=("parallel",),
            vmem_limit_bytes=32 * 1024 * 1024),
    )(x_col, w_mat)

    return out.reshape(B, C, H, W)


def features_conv_forward(planes, params, *, batch_tile=None):
    """Features_conv forward: chain of ResnetBlocks.

    planes: (B, C, H, W); params: list of (weight (C,C,3,3), bias (C,)) per block.
    """
    y = planes
    for (w, b) in params:
        y = resnet_block_forward(y, w, b, batch_tile=batch_tile)
    return y.astype(planes.dtype)


if __name__ == "__main__":
    # dim=96 is fixed by Features_conv; small batch / spatial / block count.
    B, C, H, W = 2, 96, 16, 16
    n_blocks = 2

    key = jax.random.PRNGKey(0)
    kx, key = jax.random.split(key)
    x = jax.random.normal(kx, (B, C, H, W), dtype=jnp.float32)

    # Deterministic Conv2d(96, 96, 3)-shaped parameter init per block.
    fan_in = C * 3 * 3
    bound = 1.0 / (fan_in ** 0.5)
    params = []
    for _ in range(n_blocks):
        kw_key, kb_key, key = jax.random.split(key, 3)
        w = jax.random.uniform(kw_key, (C, C, 3, 3), jnp.float32, -bound, bound)
        b = jax.random.uniform(kb_key, (C,), jnp.float32, -bound, bound)
        params.append((w, b))

    out = features_conv_forward(x, params)
    out = jax.block_until_ready(out)

    assert out.shape == (B, C, H, W)
    assert out.dtype == x.dtype
    assert bool(jnp.all(jnp.isfinite(out)))
    assert bool(jnp.all(out >= 0.0))  # ReLU output is non-negative
    print("KERNEL_OK")
</pallas_src>

<mosaic_0001>
module attributes {stable_mosaic.version = 11 : i64} {
  func.func @_resblock_kernel(%arg0: i32, %arg1: memref<2x864x256xbf16, #tpu.memory_space<vmem>>, %arg2: memref<96x864xbf16, #tpu.memory_space<vmem>>, %arg3: memref<2x96x256xbf16, #tpu.memory_space<vmem>>) attributes {dimension_semantics = [#tpu.dimension_semantics<parallel>], iteration_bounds = array<i64: 1>, scalar_prefetch = 0 : i64, scratch_operands = 0 : i64, tpu.core_type = #tpu.core_type<tc>, window_params = [{transform_indices = @transform_0, window_bounds = array<i64: 2, 864, 256>}, {pipeline_mode = #tpu.pipeline_mode<synchronous>, transform_indices = @transform_1, window_bounds = array<i64: 96, 864>}, {transform_indices = @transform_2, window_bounds = array<i64: 2, 96, 256>}]} {
    %c0 = arith.constant 0 : index
    %c0_0 = arith.constant 0 : index
    %0 = vector.load %arg2[%c0, %c0_0] : memref<96x864xbf16, #tpu.memory_space<vmem>>, vector<96x864xbf16>
    %c0_1 = arith.constant 0 : index
    %c0_2 = arith.constant 0 : index
    %c0_3 = arith.constant 0 : index
    %1 = vector.load %arg1[%c0_1, %c0_2, %c0_3] : memref<2x864x256xbf16, #tpu.memory_space<vmem>>, vector<1x864x256xbf16>
    %2 = vector.shape_cast %1 : vector<1x864x256xbf16> to vector<864x256xbf16>
    %cst = arith.constant dense<0.000000e+00> : vector<96x256xf32>
    %3 = tpu.matmul %0, %2, %cst {dimension_numbers = #tpu.dot_dimension_numbers<[1], [0], [0], [1], [0, 0, 1, 1], [], []>} : vector<96x864xbf16>, vector<864x256xbf16>, vector<96x256xf32> -> vector<96x256xf32>
    %cst_4 = arith.constant dense<0.000000e+00> : vector<96xf32>
    %4 = vector.multi_reduction <add>, %3, %cst_4 [1] : vector<96x256xf32> to vector<96xf32>
    %5 = vector.shape_cast %4 : vector<96xf32> to vector<96x1xf32>
    %cst_5 = arith.constant 3.906250e-03 : f32
    %6 = vector.broadcast %cst_5 : f32 to vector<96x1xf32>
    %7 = arith.mulf %5, %6 : vector<96x1xf32>
    %8 = arith.mulf %3, %3 : vector<96x256xf32>
    %cst_6 = arith.constant dense<0.000000e+00> : vector<96xf32>
    %9 = vector.multi_reduction <add>, %8, %cst_6 [1] : vector<96x256xf32> to vector<96xf32>
    %10 = vector.shape_cast %9 : vector<96xf32> to vector<96x1xf32>
    %cst_7 = arith.constant 3.906250e-03 : f32
    %11 = vector.broadcast %cst_7 : f32 to vector<96x1xf32>
    %12 = arith.mulf %10, %11 : vector<96x1xf32>
    %13 = arith.mulf %7, %7 : vector<96x1xf32>
    %14 = arith.subf %12, %13 : vector<96x1xf32>
    %cst_8 = arith.constant 0.000000e+00 : f32
    %15 = vector.broadcast %cst_8 : f32 to vector<96x1xf32>
    %16 = arith.maximumf %14, %15 : vector<96x1xf32>
    %17 = vector.broadcast %7 : vector<96x1xf32> to vector<96x256xf32>
    %18 = arith.subf %3, %17 : vector<96x256xf32>
    %cst_9 = arith.constant 9.99999974E-6 : f32
    %19 = vector.broadcast %cst_9 : f32 to vector<96x1xf32>
    %20 = arith.addf %16, %19 : vector<96x1xf32>
    %21 = math.rsqrt %20 : vector<96x1xf32>
    %22 = vector.broadcast %21 : vector<96x1xf32> to vector<96x256xf32>
    %23 = arith.mulf %18, %22 : vector<96x256xf32>
    %cst_10 = arith.constant 0.000000e+00 : f32
    %24 = vector.broadcast %cst_10 : f32 to vector<96x256xf32>
    %25 = arith.maximumf %23, %24 : vector<96x256xf32>
    %26 = arith.truncf %25 : vector<96x256xf32> to vector<96x256xbf16>
    %c0_11 = arith.constant 0 : index
    %c0_12 = arith.constant 0 : index
    %c0_13 = arith.constant 0 : index
    %27 = vector.load %arg3[%c0_11, %c0_12, %c0_13] : memref<2x96x256xbf16, #tpu.memory_space<vmem>>, vector<1x96x256xbf16>
    %28 = vector.shape_cast %27 : vector<1x96x256xbf16> to vector<96x256xbf16>
    %29 = vector.shape_cast %26 : vector<96x256xbf16> to vector<1x96x256xbf16>
    tpu.vector_store %arg3[%c0_11, %c0_12, %c0_13], %29 {strides = array<i32>} : memref<2x96x256xbf16, #tpu.memory_space<vmem>>, vector<1x96x256xbf16>,
    %c1 = arith.constant 1 : index
    %c0_14 = arith.constant 0 : index
    %c0_15 = arith.constant 0 : index
    %30 = vector.load %arg1[%c1, %c0_14, %c0_15] : memref<2x864x256xbf16, #tpu.memory_space<vmem>>, vector<1x864x256xbf16>
    %31 = vector.shape_cast %30 : vector<1x864x256xbf16> to vector<864x256xbf16>
    %cst_16 = arith.constant dense<0.000000e+00> : vector<96x256xf32>
    %32 = tpu.matmul %0, %31, %cst_16 {dimension_numbers = #tpu.dot_dimension_numbers<[1], [0], [0], [1], [0, 0, 1, 1], [], []>} : vector<96x864xbf16>, vector<864x256xbf16>, vector<96x256xf32> -> vector<96x256xf32>
    %cst_17 = arith.constant dense<0.000000e+00> : vector<96xf32>
    %33 = vector.multi_reduction <add>, %32, %cst_17 [1] : vector<96x256xf32> to vector<96xf32>
    %34 = vector.shape_cast %33 : vector<96xf32> to vector<96x1xf32>
    %cst_18 = arith.constant 3.906250e-03 : f32
    %35 = vector.broadcast %cst_18 : f32 to vector<96x1xf32>
    %36 = arith.mulf %34, %35 : vector<96x1xf32>
    %37 = arith.mulf %32, %32 : vector<96x256xf32>
    %cst_19 = arith.constant dense<0.000000e+00> : vector<96xf32>
    %38 = vector.multi_reduction <add>, %37, %cst_19 [1] : vector<96x256xf32> to vector<96xf32>
    %39 = vector.shape_cast %38 : vector<96xf32> to vector<96x1xf32>
    %cst_20 = arith.constant 3.906250e-03 : f32
    %40 = vector.broadcast %cst_20 : f32 to vector<96x1xf32>
    %41 = arith.mulf %39, %40 : vector<96x1xf32>
    %42 = arith.mulf %36, %36 : vector<96x1xf32>
    %43 = arith.subf %41, %42 : vector<96x1xf32>
    %cst_21 = arith.constant 0.000000e+00 : f32
    %44 = vector.broadcast %cst_21 : f32 to vector<96x1xf32>
    %45 = arith.maximumf %43, %44 : vector<96x1xf32>
    %46 = vector.broadcast %36 : vector<96x1xf32> to vector<96x256xf32>
    %47 = arith.subf %32, %46 : vector<96x256xf32>
    %cst_22 = arith.constant 9.99999974E-6 : f32
    %48 = vector.broadcast %cst_22 : f32 to vector<96x1xf32>
    %49 = arith.addf %45, %48 : vector<96x1xf32>
    %50 = math.rsqrt %49 : vector<96x1xf32>
    %51 = vector.broadcast %50 : vector<96x1xf32> to vector<96x256xf32>
    %52 = arith.mulf %47, %51 : vector<96x256xf32>
    %cst_23 = arith.constant 0.000000e+00 : f32
    %53 = vector.broadcast %cst_23 : f32 to vector<96x256xf32>
    %54 = arith.maximumf %52, %53 : vector<96x256xf32>
    %55 = arith.truncf %54 : vector<96x256xf32> to vector<96x256xbf16>
    %c1_24 = arith.constant 1 : index
    %c0_25 = arith.constant 0 : index
    %c0_26 = arith.constant 0 : index
    %56 = vector.load %arg3[%c1_24, %c0_25, %c0_26] : memref<2x96x256xbf16, #tpu.memory_space<vmem>>, vector<1x96x256xbf16>
    %57 = vector.shape_cast %56 : vector<1x96x256xbf16> to vector<96x256xbf16>
    %58 = vector.shape_cast %55 : vector<96x256xbf16> to vector<1x96x256xbf16>
    tpu.vector_store %arg3[%c1_24, %c0_25, %c0_26], %58 {strides = array<i32>} : memref<2x96x256xbf16, #tpu.memory_space<vmem>>, vector<1x96x256xbf16>,
    return
  }
  func.func @transform_0(%arg0: i32) -> (i32, i32, i32) {
    %c0_i32 = arith.constant 0 : i32
    %c0_i32_0 = arith.constant 0 : i32
    %c0_i32_1 = arith.constant 0 : i32
    return %arg0, %c0_i32, %c0_i32_0 : i32, i32, i32
  }
  func.func @transform_1(%arg0: i32) -> (i32, i32) {
    %c0_i32 = arith.constant 0 : i32
    %c0_i32_0 = arith.constant 0 : i32
    %c0_i32_1 = arith.constant 0 : i32
    return %c0_i32, %c0_i32_0 : i32, i32
  }
  func.func @transform_2(%arg0: i32) -> (i32, i32, i32) {
    %c0_i32 = arith.constant 0 : i32
    %c0_i32_0 = arith.constant 0 : i32
    %c0_i32_1 = arith.constant 0 : i32
    return %arg0, %c0_i32, %c0_i32_0 : i32, i32, i32
  }
}

</mosaic_0001>

<bundles_post_ra>
// kernel: tpu_custom_call.1
= control target key start
LH: loop header
LB: loop body
LE: loop exit
PB: predicated region body
PF: predicated region fallthrough
CT: control target
= control target key end

     0   :  { %7 = vsyncpa [#allocation3], 0  ;;  %s4806_s0 = inlined_call_operand.hbm [shape: bf16[2,864,256], index: 0, kind: input, shape index: {}]   ;;  %s4807_s1 = inlined_call_operand.hbm [shape: bf16[96,864], index: 1, kind: input, shape index: {}]   ;;  %s4808_s2 = inlined_call_operand.hbm [shape: bf16[2,96,256], index: 2, kind: output, shape index: {}]  }
   0x1   :  { %8 = vsyncpa [#allocation6], 0 }
   0x2   :  { %9 = vsyncpa [#allocation4], 0  ;;  %s3875_s9 = smov [#allocation2]  }
   0x3   :  { %s15_s10 = sshll.u32 %s3875_s9, 4  ;;  %s16_s10 = int_to_ptr.vmem [resolvable:$true] %s15_s10 }
   0x4   :  { %s3817_s11 = scalar_lea.vmem %s16_s10, 27648  ;;  %p3822_p1 = scmp.lt.s32.totalorder %s16_s10, %s16_s10 }
   0x5   :  { %p3818_p0 = scmp.ne.s32.totalorder %s16_s10, %s3817_s11  ;;  %p3823_p2 = scmp.lt.s32.totalorder %s3817_s11, %s3817_s11 }
   0x7   :  { %p3824_p3 = por %p3823_p2, %p3822_p1 }
   0x9   :  { %p3825_p4 = pnand %p3824_p3, %p3818_p0 }
   0xb   :  { %3828 = shalt.err (!%p3825_p4)
}
   0xc   :  { %s3876_s12 = smov 128   ;;  %s3877_s13 = smov 8  }
   0xd   :  { %21 = dma.hbm_to_vmem [thread:$0]  %s4806_s0, 27648, %s16_s10, [#allocation3], %s3876_s12, %s3876_s12, %s3877_s13  }
   0xe   :  { %s3878_s16 = smov [#allocation5]  }
   0xf   :  { %s27_s17 = sshll.u32 %s3878_s16, 4  ;;  %s28_s17 = int_to_ptr.vmem [resolvable:$true] %s27_s17 }
  0x10   :  { %s3837_s18 = scalar_lea.vmem %s28_s17, 5376  ;;  %p3842_p6 = scmp.lt.s32.totalorder %s28_s17, %s28_s17 }
  0x11   :  { %p3838_p5 = scmp.ne.s32.totalorder %s28_s17, %s3837_s18  ;;  %p3843_p7 = scmp.lt.s32.totalorder %s3837_s18, %s3837_s18 }
  0x13   :  { %p3844_p8 = por %p3843_p7, %p3842_p6 }
  0x15   :  { %p3845_p9 = pnand %p3844_p8, %p3838_p5 }
  0x17   :  { %3848 = shalt.err (!%p3845_p9)
}
  0x18   :  { %s3879_s19 = smov 448   ;;  %s3880_s20 = smov 28  }
  0x19   :  { %33 = dma.hbm_to_vmem [thread:$0]  %s4807_s1, 5376, %s28_s17, [#allocation6], %s3879_s19, %s3879_s19, %s3880_s20  }
  0x1a   :  { %3869 = dma.done.wait [#allocation3], 27648  }
  0x1b   :  { %3870 = vsyncadd [#allocation3], 4294939648 }
  0x1c   :  { %3871 = dma.done.wait [#allocation6], 5376  }
  0x1d   :  { %3872 = vsyncadd [#allocation6], 4294961920  ;;  %v3376_v0 = vld [vmem:[#allocation2 + $0x74] ss:$8 sps:$4 sm:$0xff]   ;;  %v3380_v2 = vld [vmem:[#allocation2 + $0x70] ss:$8 sps:$4 sm:$0xff]  }
  0x1e   :  { %v3378_v1 = vld [vmem:[#allocation2 + $0x174] ss:$8 sps:$4 sm:$0xff]   ;;  %966 = vmatprep.subr.bf16.mxu0 %v3376_v0  ;;  %v3381_v3 = vld [vmem:[#allocation2 + $0x170] ss:$8 sps:$4 sm:$0xff]   ;;  %v3382_v4 = vld [vmem:[#allocation2 + $0x64] ss:$8 sps:$4 sm:$0xff]  }
  0x1f   :  { %1059 = vmatprep.subr.bf16.mxu1 %v3378_v1  ;;  %967 = vmatpush1.bf16.msra.mxu0 %v3380_v2  ;;  %v3384_v5 = vld [vmem:[#allocation2 + $0x164] ss:$8 sps:$4 sm:$0xff]   ;;  %v3386_v6 = vld [vmem:[#allocation2 + $0x60] ss:$8 sps:$4 sm:$0xff]   ;;  %v3388_v8 = vld [vmem:[#allocation2 + $0x54] ss:$8 sps:$4 sm:$0xff]  }
  0x20   :  { %1060 = vmatpush1.bf16.msra.mxu1 %v3381_v3  ;;  %968 = vmatprep.subr.bf16.mxu0 %v3382_v4  ;;  %v3387_v7 = vld [vmem:[#allocation2 + $0x160] ss:$8 sps:$4 sm:$0xff]   ;;  %v3390_v9 = vld [vmem:[#allocation2 + $0x154] ss:$8 sps:$4 sm:$0xff]   ;;  %v3392_v10 = vld [vmem:[#allocation2 + $0x50] ss:$8 sps:$4 sm:$0xff]  }
  0x21   :  { %1061 = vmatprep.subr.bf16.mxu1 %v3384_v5  ;;  %v3393_v11 = vld [vmem:[#allocation2 + $0x150] ss:$8 sps:$4 sm:$0xff]   ;;  %v3394_v12 = vld [vmem:[#allocation2 + $0x44] ss:$8 sps:$4 sm:$0xff]   ;;  %v3398_v14 = vld [vmem:[#allocation2 + $0x40] ss:$8 sps:$4 sm:$0xff]  }
  0x22   :  { %v3396_v13 = vld [vmem:[#allocation2 + $0x144] ss:$8 sps:$4 sm:$0xff]   ;;  %v3399_v15 = vld [vmem:[#allocation2 + $0x140] ss:$8 sps:$4 sm:$0xff]   ;;  %v3400_v16 = vld [vmem:[#allocation2 + $0x34] ss:$8 sps:$4 sm:$0xff]  }
  0x23   :  { %969 = vmatpush1.bf16.msra.mxu0 %v3386_v6  ;;  %v3402_v17 = vld [vmem:[#allocation2 + $0x134] ss:$8 sps:$4 sm:$0xff]   ;;  %v3404_v18 = vld [vmem:[#allocation2 + $0x30] ss:$8 sps:$4 sm:$0xff]   ;;  %v3406_v20 = vld [vmem:[#allocation2 + $0x24] ss:$8 sps:$4 sm:$0xff]  }
  0x24   :  { %1062 = vmatpush1.bf16.msra.mxu1 %v3387_v7  ;;  %970 = vmatprep.subr.bf16.mxu0 %v3388_v8  ;;  %v3405_v19 = vld [vmem:[#allocation2 + $0x130] ss:$8 sps:$4 sm:$0xff]   ;;  %v3408_v21 = vld [vmem:[#allocation2 + $0x124] ss:$8 sps:$4 sm:$0xff]   ;;  %v3410_v22 = vld [vmem:[#allocation2 + $0x20] ss:$8 sps:$4 sm:$0xff]  }
  0x25   :  { %1063 = vmatprep.subr.bf16.mxu1 %v3390_v9  ;;  %v3411_v23 = vld [vmem:[#allocation2 + $0x120] ss:$8 sps:$4 sm:$0xff]   ;;  %v3412_v24 = vld [vmem:[#allocation2 + $0x14] ss:$8 sps:$4 sm:$0xff]   ;;  %v3416_v26 = vld [vmem:[#allocation2 + $0x10] ss:$8 sps:$4 sm:$0xff]  }
  0x26   :  { %v3414_v25 = vld [vmem:[#allocation2 + $0x114] ss:$8 sps:$4 sm:$0xff]   ;;  %v3417_v27 = vld [vmem:[#allocation2 + $0x110] ss:$8 sps:$4 sm:$0xff]   ;;  %v3418_v28 = vld [vmem:[#allocation2 + $0x4] ss:$8 sps:$4 sm:$0xff]  }
  0x27   :  { %971 = vmatpush1.bf16.msra.mxu0 %v3392_v10  ;;  %v3420_v29 = vld [vmem:[#allocation2 + $0x104] ss:$8 sps:$4 sm:$0xff]   ;;  %v3422_v30 = vld [vmem:[#allocation2] ss:$8 sps:$4 sm:$0xff]   ;;  %v3424_v32 = vld [vmem:[#allocation2 + $0xf4] ss:$8 sps:$4 sm:$0xff]  }
  0x28   :  { %1064 = vmatpush1.bf16.msra.mxu1 %v3393_v11  ;;  %972 = vmatprep.subr.bf16.mxu0 %v3394_v12  ;;  %v3423_v31 = vld [vmem:[#allocation2 + $0x100] ss:$8 sps:$4 sm:$0xff]   ;;  %v3426_v33 = vld [vmem:[#allocation2 + $0x1f4] ss:$8 sps:$4 sm:$0xff]   ;;  %v3428_v34 = vld [vmem:[#allocation2 + $0xf0] ss:$8 sps:$4 sm:$0xff]  }
  0x29   :  { %1065 = vmatprep.subr.bf16.mxu1 %v3396_v13  ;;  %v3429_v35 = vld [vmem:[#allocation2 + $0x1f0] ss:$8 sps:$4 sm:$0xff]   ;;  %v3430_v36 = vld [vmem:[#allocation2 + $0xe4] ss:$8 sps:$4 sm:$0xff]   ;;  %v3434_v38 = vld [vmem:[#allocation2 + $0xe0] ss:$8 sps:$4 sm:$0xff]  }
  0x2a   :  { %v3432_v37 = vld [vmem:[#allocation2 + $0x1e4] ss:$8 sps:$4 sm:$0xff]   ;;  %v3435_v39 = vld [vmem:[#allocation2 + $0x1e0] ss:$8 sps:$4 sm:$0xff]   ;;  %v3436_v40 = vld [vmem:[#allocation2 + $0xd4] ss:$8 sps:$4 sm:$0xff]  }
  0x2b   :  { %973 = vmatpush1.bf16.msra.mxu0 %v3398_v14  ;;  %v3438_v41 = vld [vmem:[#allocation2 + $0x1d4] ss:$8 sps:$4 sm:$0xff]   ;;  %v3440_v42 = vld [vmem:[#allocation2 + $0xd0] ss:$8 sps:$4 sm:$0xff]   ;;  %v3442_v44 = vld [vmem:[#allocation2 + $0xc4] ss:$8 sps:$4 sm:$0xff]  }
  0x2c   :  { %1066 = vmatpush1.bf16.msra.mxu1 %v3399_v15  ;;  %974 = vmatprep.subr.bf16.mxu0 %v3400_v16  ;;  %v3441_v43 = vld [vmem:[#allocation2 + $0x1d0] ss:$8 sps:$4 sm:$0xff]   ;;  %v3444_v45 = vld [vmem:[#allocation2 + $0x1c4] ss:$8 sps:$4 sm:$0xff]   ;;  %v3446_v46 = vld [vmem:[#allocation2 + $0xc0] ss:$8 sps:$4 sm:$0xff]  }
  0x2d   :  { %1067 = vmatprep.subr.bf16.mxu1 %v3402_v17  ;;  %v3447_v47 = vld [vmem:[#allocation2 + $0x1c0] ss:$8 sps:$4 sm:$0xff]   ;;  %v3448_v48 = vld [vmem:[#allocation2 + $0xb4] ss:$8 sps:$4 sm:$0xff]   ;;  %v3452_v52 = vld [vmem:[#allocation2 + $0xb0] ss:$8 sps:$4 sm:$0xff]  }
  0x2e   :  { %v3907_v49 = vld [vmem:[#allocation5 + $0x4] ss:$28 sps:$4 sm:$0xff]   ;;  %v3450_v50 = vld [vmem:[#allocation2 + $0x1b4] ss:$8 sps:$4 sm:$0xff]   ;;  %v3477_v51 = vld [vmem:[#allocation5 + $0xc] ss:$28 sps:$4 sm:$0xff]  }
  0x2f   :  { %975 = vmatpush1.bf16.msra.mxu0 %v3404_v18  ;;  %998 = vmatprep.mubr.bf16.mxu0 %v3907_v49  ;;  %v3453_v53 = vld [vmem:[#allocation2 + $0x1b0] ss:$8 sps:$4 sm:$0xff]   ;;  %v3454_v54 = vld [vmem:[#allocation2 + $0xa4] ss:$8 sps:$4 sm:$0xff]   ;;  %v3458_v56 = vld [vmem:[#allocation2 + $0xa0] ss:$8 sps:$4 sm:$0xff]  }
  0x30   :  { %1068 = vmatpush1.bf16.msra.mxu1 %v3405_v19  ;;  %976 = vmatprep.subr.bf16.mxu0 %v3406_v20  ;;  %v3456_v55 = vld [vmem:[#allocation2 + $0x1a4] ss:$8 sps:$4 sm:$0xff]   ;;  %v3459_v57 = vld [vmem:[#allocation2 + $0x1a0] ss:$8 sps:$4 sm:$0xff]   ;;  %v3460_v58 = vld [vmem:[#allocation2 + $0x94] ss:$8 sps:$4 sm:$0xff]  }
  0x31   :  { %1069 = vmatprep.subr.bf16.mxu1 %v3408_v21  ;;  %1091 = vmatprep.mubr.bf16.mxu1 %v3477_v51  ;;  %v3462_v59 = vld [vmem:[#allocation2 + $0x194] ss:$8 sps:$4 sm:$0xff]   ;;  %v3464_v60 = vld [vmem:[#allocation2 + $0x90] ss:$8 sps:$4 sm:$0xff]   ;;  %v3466_v62 = vld [vmem:[#allocation2 + $0x84] ss:$8 sps:$4 sm:$0xff]  }
  0x32   :  { %v3465_v61 = vld [vmem:[#allocation2 + $0x190] ss:$8 sps:$4 sm:$0xff]   ;;  %v3468_v63 = vld [vmem:[#allocation2 + $0x184] ss:$8 sps:$4 sm:$0xff]   ;;  %v3470_v0 = vld [vmem:[#allocation2 + $0x80] ss:$8 sps:$4 sm:$0xff]  }
  0x33   :  { %977 = vmatpush1.bf16.msra.mxu0 %v3410_v22  ;;  %v3471_v1 = vld [vmem:[#allocation2 + $0x180] ss:$8 sps:$4 sm:$0xff]   ;;  %v3480_v2 = vld [vmem:[#allocation2 + $0x274] ss:$8 sps:$4 sm:$0xff]   ;;  %v3478_v6 = vld [vmem:[#allocation2 + $0x270] ss:$8 sps:$4 sm:$0xff]  }
  0x34   :  { %1070 = vmatpush1.bf16.msra.mxu1 %v3411_v23  ;;  %978 = vmatprep.subr.bf16.mxu0 %v3412_v24  ;;  %v3483_v3 = vld [vmem:[#allocation2 + $0x354] ss:$8 sps:$4 sm:$0xff]   ;;  %v3912_v5 = vld [vmem:[#allocation5 + $0x8] ss:$28 sps:$4 sm:$0xff]   ;;  %v3481_v7 = vld [vmem:[#allocation2 + $0x350] ss:$8 sps:$4 sm:$0xff]  }
  0x35   :  { %1071 = vmatprep.subr.bf16.mxu1 %v3414_v25  ;;  %v3910_v4 = vld [vmem:[#allocation5] ss:$28 sps:$4 sm:$0xff]   ;;  %v3486_v8 = vld [vmem:[#allocation2 + $0x264] ss:$8 sps:$4 sm:$0xff]   ;;  %v3922_v16 = vld [vmem:[#allocation5 + $0x38] ss:$28 sps:$4 sm:$0xff]  }
  0x36   :  { %v3914_v9 = vld [vmem:[#allocation5 + $0x3c] ss:$28 sps:$4 sm:$0xff]   ;;  %v3916_v10 = vld [vmem:[#allocation5 + $0x44] ss:$28 sps:$4 sm:$0xff]   ;;  %v3926_v20 = vld [vmem:[#allocation5 + $0x74] ss:$28 sps:$4 sm:$0xff]  }
  0x37   :  { %979 = vmatpush1.bf16.msra.mxu0 %v3416_v26  ;;  %v3498_v11 = vld [vmem:[#allocation2 + $0x344] ss:$8 sps:$4 sm:$0xff]   ;;  %v3484_v12 = vld [vmem:[#allocation2 + $0x260] ss:$8 sps:$4 sm:$0xff]   ;;  %v3495_v13 = vld [vmem:[#allocation2 + $0x254] ss:$8 sps:$4 sm:$0xff]  }
  0x38   :  { %1072 = vmatpush1.bf16.msra.mxu1 %v3417_v27  ;;  %980 = vmatprep.subr.bf16.mxu0 %v3418_v28  ;;  %v3496_v14 = vld [vmem:[#allocation2 + $0x340] ss:$8 sps:$4 sm:$0xff]   ;;  %v3513_v15 = vld [vmem:[#allocation2 + $0x334] ss:$8 sps:$4 sm:$0xff]   ;;  %v3493_v18 = vld [vmem:[#allocation2 + $0x250] ss:$8 sps:$4 sm:$0xff]  }
  0x39   :  { %1073 = vmatprep.subr.bf16.mxu1 %v3420_v29  ;;  %v3924_v17 = vld [vmem:[#allocation5 + $0x40] ss:$28 sps:$4 sm:$0xff]   ;;  %v3501_v19 = vld [vmem:[#allocation2 + $0x244] ss:$8 sps:$4 sm:$0xff]   ;;  %v3511_v22 = vld [vmem:[#allocation2 + $0x330] ss:$8 sps:$4 sm:$0xff]  }
  0x3a   :  { %v3928_v21 = vld [vmem:[#allocation5 + $0x7c] ss:$28 sps:$4 sm:$0xff]   ;;  %v3528_v23 = vld [vmem:[#allocation2 + $0x324] ss:$8 sps:$4 sm:$0xff]   ;;  %v3499_v24 = vld [vmem:[#allocation2 + $0x240] ss:$8 sps:$4 sm:$0xff]  }
  0x3b   :  { %981 = vmatpush1.bf16.msra.mxu0 %v3422_v30  ;;  %v3934_v25 = vld [vmem:[#allocation5 + $0x70] ss:$28 sps:$4 sm:$0xff]   ;;  %v3510_v26 = vld [vmem:[#allocation2 + $0x234] ss:$8 sps:$4 sm:$0xff]   ;;  %v3526_v28 = vld [vmem:[#allocation2 + $0x320] ss:$8 sps:$4 sm:$0xff]  }
  0x3c   :  { %1074 = vmatpush1.bf16.msra.mxu1 %v3423_v31  ;;  %982 = vmatprep.subr.bf16.mxu0 %v3424_v32  ;;  %v3936_v27 = vld [vmem:[#allocation5 + $0x78] ss:$28 sps:$4 sm:$0xff]   ;;  %v3516_v30 = vld [vmem:[#allocation2 + $0x224] ss:$8 sps:$4 sm:$0xff]   ;;  %vm947_vm0 = vcmask 785408   ;;  %s3882_s0 = smov [#allocation7]  }
  0x3d   :  { %1075 = vmatprep.subr.bf16.mxu1 %v3426_v33  ;;  %v3508_v29 = vld [vmem:[#allocation2 + $0x230] ss:$8 sps:$4 sm:$0xff]   ;;  %v3938_v31 = vld [vmem:[#allocation5 + $0xac] ss:$28 sps:$4 sm:$0xff]   ;;  %v3543_v33 = vld [vmem:[#allocation2 + $0x314] ss:$8 sps:$4 sm:$0xff]  }
  0x3e   :  { %v3940_v32 = vld [vmem:[#allocation5 + $0xb4] ss:$28 sps:$4 sm:$0xff]   ;;  %s3037_s1 = sshll.u32 %s3882_s0, 4  ;;  %s3038_s1 = int_to_ptr.vmem [resolvable:$true] %s3037_s1 }
  0x3f   :  { %983 = vmatpush2.bf16.msra.mxu0 %v3428_v34  ;;  %v3514_v34 = vld [vmem:[#allocation2 + $0x220] ss:$8 sps:$4 sm:$0xff]   ;;  %v3538_v51 = vld [vmem:[#allocation2 + $0x2f0] ss:$8 sps:$4 sm:$0xff]   ;;  %s3849_s23 = scalar_lea.vmem %s3038_s1, 3072  ;;  %p3854_p11 = scmp.lt.s32.totalorder %s3038_s1, %s3038_s1 }
  0x40   :  { %1076 = vmatpush2.bf16.msra.mxu1 %v3429_v35  ;;  %984 = vmatprep.subr.bf16.mxu0 %v3430_v36  ;;  %v3541_v35 = vld [vmem:[#allocation2 + $0x310] ss:$8 sps:$4 sm:$0xff]   ;;  %v3558_v36 = vld [vmem:[#allocation2 + $0x304] ss:$8 sps:$4 sm:$0xff]   ;;  %p3850_p10 = scmp.ne.s32.totalorder %s3038_s1, %s3849_s23  ;;  %p3855_p12 = scmp.lt.s32.totalorder %s3849_s23, %s3849_s23 }
  0x41   :  { %1077 = vmatprep.subr.bf16.mxu1 %v3432_v37  ;;  %v3525_v37 = vld [vmem:[#allocation2 + $0x214] ss:$8 sps:$4 sm:$0xff]  }
  0x42   :  { %p3856_p13 = por %p3855_p12, %p3854_p11 }
  0x43   :  { %985 = vmatpush2.bf16.msra.mxu0 %v3434_v38  ;;  %v3946_v38 = vld [vmem:[#allocation5 + $0xa8] ss:$28 sps:$4 sm:$0xff]  }
  0x44   :  { %1078 = vmatpush2.bf16.msra.mxu1 %v3435_v39  ;;  %986 = vmatprep.subr.bf16.mxu0 %v3436_v40  ;;  %v3948_v39 = vld [vmem:[#allocation5 + $0xb0] ss:$28 sps:$4 sm:$0xff]   ;;  %p3857_p0 = pnand %p3856_p13, %p3850_p10 }
  0x45   :  { %1079 = vmatprep.subr.bf16.mxu1 %v3438_v41  ;;  %v3523_v40 = vld [vmem:[#allocation2 + $0x210] ss:$8 sps:$4 sm:$0xff]   ;;  %v3531_v41 = vld [vmem:[#allocation2 + $0x204] ss:$8 sps:$4 sm:$0xff]  }
  0x47   :  { %987 = vmatpush2.bf16.msra.mxu0 %v3440_v42  ;;  %v3950_v42 = vld [vmem:[#allocation5 + $0xe4] ss:$28 sps:$4 sm:$0xff]  }
  0x48   :  { %1080 = vmatpush2.bf16.msra.mxu1 %v3441_v43  ;;  %988 = vmatprep.subr.bf16.mxu0 %v3442_v44  ;;  %v3952_v43 = vld [vmem:[#allocation5 + $0xec] ss:$28 sps:$4 sm:$0xff]  }
  0x49   :  { %1081 = vmatprep.subr.bf16.mxu1 %v3444_v45  ;;  %v3556_v44 = vld [vmem:[#allocation2 + $0x300] ss:$8 sps:$4 sm:$0xff]   ;;  %v3564_v45 = vld [vmem:[#allocation2 + $0x3d4] ss:$8 sps:$4 sm:$0xff]  }
  0x4b   :  { %989 = vmatpush2.bf16.msra.mxu0 %v3446_v46  ;;  %v3529_v46 = vld [vmem:[#allocation2 + $0x200] ss:$8 sps:$4 sm:$0xff]  }
  0x4c   :  { %1082 = vmatpush2.bf16.msra.mxu1 %v3447_v47  ;;  %990 = vmatprep.subr.bf16.mxu0 %v3448_v48  ;;  %v3540_v47 = vld [vmem:[#allocation2 + $0x2f4] ss:$8 sps:$4 sm:$0xff]  }
  0x4d   :  { %1083 = vmatprep.subr.bf16.mxu1 %v3450_v50  ;;  %v3958_v48 = vld [vmem:[#allocation5 + $0xe0] ss:$28 sps:$4 sm:$0xff]   ;;  %v3960_v50 = vld [vmem:[#allocation5 + $0xe8] ss:$28 sps:$4 sm:$0xff]  }
  0x4f   :  { %991 = vmatpush2.bf16.msra.mxu0 %v3452_v52  ;;  %v3546_v52 = vld [vmem:[#allocation2 + $0x2e4] ss:$8 sps:$4 sm:$0xff]  }
  0x50   :  { %1084 = vmatpush2.bf16.msra.mxu1 %v3453_v53  ;;  %992 = vmatprep.subr.bf16.mxu0 %v3454_v54  ;;  %v3962_v53 = vld [vmem:[#allocation5 + $0x11c] ss:$28 sps:$4 sm:$0xff]   ;;  %v3964_v54 = vld [vmem:[#allocation5 + $0x124] ss:$28 sps:$4 sm:$0xff]  }
  0x51   :  { %1085 = vmatprep.subr.bf16.mxu1 %v3456_v55  ;;  %v3544_v55 = vld [vmem:[#allocation2 + $0x2e0] ss:$8 sps:$4 sm:$0xff]  }
  0x53   :  { %993 = vmatpush2.bf16.msra.mxu0 %v3458_v56  ;;  %v3555_v56 = vld [vmem:[#allocation2 + $0x2d4] ss:$8 sps:$4 sm:$0xff]  }
  0x54   :  { %1086 = vmatpush2.bf16.msra.mxu1 %v3459_v57  ;;  %994 = vmatprep.subr.bf16.mxu0 %v3460_v58  ;;  %v3970_v57 = vld [vmem:[#allocation5 + $0x118] ss:$28 sps:$4 sm:$0xff]   ;;  %v3972_v58 = vld [vmem:[#allocation5 + $0x120] ss:$28 sps:$4 sm:$0xff]  }
  0x55   :  { %1087 = vmatprep.subr.bf16.mxu1 %v3462_v59  ;;  %v3553_v59 = vld [vmem:[#allocation2 + $0x2d0] ss:$8 sps:$4 sm:$0xff]  }
  0x57   :  { %995 = vmatpush2.bf16.msra.mxu0 %v3464_v60  ;;  %v3561_v60 = vld [vmem:[#allocation2 + $0x2c4] ss:$8 sps:$4 sm:$0xff]  }
  0x58   :  { %1088 = vmatpush2.bf16.msra.mxu1 %v3465_v61  ;;  %996 = vmatprep.subr.bf16.mxu0 %v3466_v62  ;;  %v3974_v61 = vld [vmem:[#allocation5 + $0x14] ss:$28 sps:$4 sm:$0xff]   ;;  %v3559_v62 = vld [vmem:[#allocation2 + $0x2c0] ss:$8 sps:$4 sm:$0xff]  }
  0x59   :  { %1089 = vmatprep.subr.bf16.mxu1 %v3468_v63  ;;  %v3881_v63 = vmov 0  }
  0x5b   :  { %997 = vmatpush2.bf16.msra.mxu0 %v3470_v0  ;;  %v3567_v0 = vld [vmem:[#allocation2 + $0x2b4] ss:$8 sps:$4 sm:$0xff]  }
  0x5c   :  { %1090 = vmatpush2.bf16.msra.mxu1 %v3471_v1  ;;  %1152 = vmatprep.subr.bf16.mxu0 %v3480_v2  ;;  %v3562_v1 = vld [vmem:[#allocation2 + $0x3d0] ss:$8 sps:$4 sm:$0xff]  }
  0x5d   :  { %1249 = vmatprep.subr.bf16.mxu1 %v3483_v3  ;;  %v3980_v2 = vld [vmem:[#allocation5 + $0x18] ss:$28 sps:$4 sm:$0xff]  }
  0x5e   :  { %999 = vmatmul.mubr.bf16.vlgmr.msra.gmra.mxu0 %v3910_v4  ;;  %v3565_v3 = vld [vmem:[#allocation2 + $0x2b0] ss:$8 sps:$4 sm:$0xff]  }
  0x5f   :  { %1092 = vmatmul.mubr.bf16.vlgmr.msra.gmra.mxu1 %v3912_v5  ;;  %1153 = vmatpush1.bf16.msra.mxu0 %v3478_v6  ;;  %v3571_v6 = vld [vmem:[#allocation2 + $0x3c4] ss:$8 sps:$4 sm:$0xff]  }
  0x60   :  { %1250 = vmatpush1.bf16.msra.mxu1 %v3481_v7  ;;  %1154 = vmatprep.subr.bf16.mxu0 %v3486_v8  ;;  %v3574_v7 = vld [vmem:[#allocation2 + $0x2a4] ss:$8 sps:$4 sm:$0xff]   ;;  %v3569_v8 = vld [vmem:[#allocation2 + $0x3c0] ss:$8 sps:$4 sm:$0xff]  }
  0x61   :  { %1008 = vmatprep.mubr.bf16.mxu0 %v3914_v9  ;;  %1101 = vmatprep.mubr.bf16.mxu1 %v3916_v10 }
  0x62   :  { %1251 = vmatprep.subr.bf16.mxu1 %v3498_v11  ;;  %v3572_v11 = vld [vmem:[#allocation2 + $0x2a0] ss:$8 sps:$4 sm:$0xff]  }
  0x63   :  { %1155 = vmatpush1.bf16.msra.mxu0 %v3484_v12  ;;  %v3577_v12 = vld [vmem:[#allocation2 + $0x3b4] ss:$8 sps:$4 sm:$0xff]  }
  0x64   :  { %1252 = vmatpush1.bf16.msra.mxu1 %v3496_v14  ;;  %1156 = vmatprep.subr.bf16.mxu0 %v3495_v13  ;;  %v3580_v13 = vld [vmem:[#allocation2 + $0x294] ss:$8 sps:$4 sm:$0xff]   ;;  %v3575_v14 = vld [vmem:[#allocation2 + $0x3b0] ss:$8 sps:$4 sm:$0xff]  }
  0x65   :  { %1253 = vmatprep.subr.bf16.mxu1 %v3513_v15  ;;  %v3578_v15 = vld [vmem:[#allocation2 + $0x290] ss:$8 sps:$4 sm:$0xff]  }
  0x66   :  { %1009 = vmatmul.mubr.bf16.gmra.mxu0 %v3922_v16 }
  0x67   :  { %1102 = vmatmul.mubr.bf16.gmra.mxu1 %v3924_v17  ;;  %1157 = vmatpush1.bf16.msra.mxu0 %v3493_v18  ;;  %v3985_v18 = vld [vmem:[#allocation5 + $0x50] ss:$28 sps:$4 sm:$0xff]  }
  0x68   :  { %1018 = vmatprep.mubr.bf16.mxu0 %v3926_v20  ;;  %1158 = vmatprep.subr.bf16.mxu0 %v3501_v19  ;;  %v3583_v19 = vld [vmem:[#allocation2 + $0x3a4] ss:$8 sps:$4 sm:$0xff]  }
  0x69   :  { %1111 = vmatprep.mubr.bf16.mxu1 %v3928_v21  ;;  %1254 = vmatpush1.bf16.msra.mxu1 %v3511_v22  ;;  %v3586_v22 = vld [vmem:[#allocation2 + $0x284] ss:$8 sps:$4 sm:$0xff]  }
  0x6a   :  { %1255 = vmatprep.subr.bf16.mxu1 %v3528_v23  ;;  %v3581_v23 = vld [vmem:[#allocation2 + $0x3a0] ss:$8 sps:$4 sm:$0xff]  }
  0x6b   :  { %1159 = vmatpush1.bf16.msra.mxu0 %v3499_v24  ;;  %v3584_v24 = vld [vmem:[#allocation2 + $0x280] ss:$8 sps:$4 sm:$0xff]  }
  0x6c   :  { %1160 = vmatprep.subr.bf16.mxu0 %v3510_v26  ;;  %v3592_v26 = vld [vmem:[#allocation2 + $0x394] ss:$8 sps:$4 sm:$0xff]  }
  0x6d   :  { %1256 = vmatpush1.bf16.msra.mxu1 %v3526_v28  ;;  %v3595_v28 = vld [vmem:[#allocation2 + $0x4d4] ss:$8 sps:$4 sm:$0xff]  }
  0x6e   :  { %1019 = vmatmul.mubr.bf16.gmra.mxu0 %v3934_v25  ;;  %1257 = vmatprep.subr.bf16.mxu1 %v3543_v33  ;;  %v3992_v33 = vld [vmem:[#allocation5 + $0x88] ss:$28 sps:$4 sm:$0xff]  }
  0x6f   :  { %1112 = vmatmul.mubr.bf16.gmra.mxu1 %v3936_v27  ;;  %1161 = vmatpush1.bf16.msra.mxu0 %v3508_v29  ;;  %v3989_v29 = vld [vmem:[#allocation5 + $0x10] ss:$28 sps:$4 sm:$0xff]  }
  0x70   :  { %1028 = vmatprep.mubr.bf16.mxu0 %v3938_v31  ;;  %1162 = vmatprep.subr.bf16.mxu0 %v3516_v30  ;;  %v3590_v30 = vld [vmem:[#allocation2 + $0x390] ss:$8 sps:$4 sm:$0xff]  }
  0x71   :  { %1121 = vmatprep.mubr.bf16.mxu1 %v3940_v32  ;;  %1258 = vmatpush1.bf16.msra.mxu1 %v3541_v35  ;;  %v3599_v35 = vld [vmem:[#allocation2 + $0x384] ss:$8 sps:$4 sm:$0xff]  }
  0x72   :  { %1259 = vmatprep.subr.bf16.mxu1 %v3558_v36  ;;  %v3602_v36 = vld [vmem:[#allocation2 + $0x4c4] ss:$8 sps:$4 sm:$0xff]  }
  0x73   :  { %1163 = vmatpush1.bf16.msra.mxu0 %v3514_v34  ;;  %v3593_v34 = vld [vmem:[#allocation2 + $0x4d0] ss:$8 sps:$4 sm:$0xff]  }
  0x74   :  { %1164 = vmatprep.subr.bf16.mxu0 %v3525_v37  ;;  %v3994_v37 = vld [vmem:[#allocation5 + $0x4c] ss:$28 sps:$4 sm:$0xff]  }
  0x75   :  { %1260 = vmatpush1.bf16.msra.mxu1 %v3556_v44  ;;  %v3607_v44 = vld [vmem:[#allocation2 + $0x374] ss:$8 sps:$4 sm:$0xff]  }
  0x76   :  { %1029 = vmatmul.mubr.bf16.gmra.mxu0 %v3946_v38  ;;  %2323 = vmatprep.subr.bf16.mxu1 %v3564_v45  ;;  %v3611_v45 = vld [vmem:[#allocation2 + $0x4b4] ss:$8 sps:$4 sm:$0xff]  }
  0x77   :  { %1122 = vmatmul.mubr.bf16.gmra.mxu1 %v3948_v39  ;;  %1165 = vmatpush1.bf16.msra.mxu0 %v3523_v40  ;;  %v3597_v40 = vld [vmem:[#allocation2 + $0x380] ss:$8 sps:$4 sm:$0xff]  }
  0x78   :  { %1038 = vmatprep.mubr.bf16.mxu0 %v3950_v42  ;;  %1166 = vmatprep.subr.bf16.mxu0 %v3531_v41  ;;  %v3600_v41 = vld [vmem:[#allocation2 + $0x4c0] ss:$8 sps:$4 sm:$0xff]  }
  0x79   :  { %1131 = vmatprep.mubr.bf16.mxu1 %v3952_v43 }
  0x7b   :  { %1167 = vmatpush1.bf16.msra.mxu0 %v3529_v46  ;;  %v4000_v46 = vld [vmem:[#allocation5 + $0x48] ss:$28 sps:$4 sm:$0xff]  }
  0x7c   :  { %1168 = vmatprep.subr.bf16.mxu0 %v3540_v47  ;;  %v4003_v47 = vld [vmem:[#allocation5 + $0xc0] ss:$28 sps:$4 sm:$0xff]  }
  0x7e   :  { %1039 = vmatmul.mubr.bf16.gmra.mxu0 %v3958_v48 }
  0x7f   :  { %1132 = vmatmul.mubr.bf16.gmra.mxu1 %v3960_v50  ;;  %1169 = vmatpush2.bf16.msra.mxu0 %v3538_v51  ;;  %v3605_v51 = vld [vmem:[#allocation2 + $0x370] ss:$8 sps:$4 sm:$0xff]  }
  0x80   :  { %1048 = vmatprep.mubr.bf16.mxu0 %v3962_v53  ;;  %1170 = vmatprep.subr.bf16.mxu0 %v3546_v52  ;;  %v3609_v52 = vld [vmem:[#allocation2 + $0x4b0] ss:$8 sps:$4 sm:$0xff]  }
  0x81   :  { %1141 = vmatprep.mubr.bf16.mxu1 %v3964_v54 }
  0x83   :  { %1171 = vmatpush2.bf16.msra.mxu0 %v3544_v55  ;;  %v3615_v55 = vld [vmem:[#allocation2 + $0x364] ss:$8 sps:$4 sm:$0xff]  }
  0x84   :  { %1172 = vmatprep.subr.bf16.mxu0 %v3555_v56  ;;  %v3618_v56 = vld [vmem:[#allocation2 + $0x4a4] ss:$8 sps:$4 sm:$0xff]  }
  0x86   :  { %1049 = vmatmul.mubr.bf16.gmra.mxu0 %v3970_v57 }
  0x87   :  { %1142 = vmatmul.mubr.bf16.gmra.mxu1 %v3972_v58  ;;  %1173 = vmatpush2.bf16.msra.mxu0 %v3553_v59  ;;  %v4005_v59 = vld [vmem:[#allocation5 + $0x84] ss:$28 sps:$4 sm:$0xff]  }
  0x88   :  { %1277 = vmatprep.mubr.bf16.mxu1 %v3881_v63  ;;  %1174 = vmatprep.subr.bf16.mxu0 %v3561_v60  ;;  %v3613_v60 = vld [vmem:[#allocation2 + $0x360] ss:$8 sps:$4 sm:$0xff]  }
  0x89   :  { %1184 = vmatprep.mubr.bf16.mxu0 %v3974_v61 }
  0x8b   :  { %1175 = vmatpush2.bf16.msra.mxu0 %v3559_v62  ;;  %v3616_v62 = vld [vmem:[#allocation2 + $0x4a0] ss:$8 sps:$4 sm:$0xff]  }
  0x8c   :  { %1176 = vmatprep.subr.bf16.mxu0 %v3567_v0  ;;  %v3623_v0 = vld [vmem:[#allocation2 + $0x454] ss:$8 sps:$4 sm:$0xff]  }
  0x8f   :  { %3200 = vmatmul.mubr.msk.bf16.vlgmr.msra.gmra.mxu1 %vm947_vm0, %v3980_v2  ;;  %1177 = vmatpush2.bf16.msra.mxu0 %v3565_v3  ;;  %v4011_v3 = vld [vmem:[#allocation5 + $0x80] ss:$28 sps:$4 sm:$0xff]  }
  0x90   :  { %2324 = vmatpush1.bf16.msra.mxu1 %v3562_v1  ;;  %1178 = vmatprep.subr.bf16.mxu0 %v3574_v7  ;;  %v3627_v1 = vld [vmem:[#allocation2 + $0x494] ss:$8 sps:$4 sm:$0xff]   ;;  %v3621_v7 = vld [vmem:[#allocation2 + $0x450] ss:$8 sps:$4 sm:$0xff]  }
  0x91   :  { %2325 = vmatprep.subr.bf16.mxu1 %v3571_v6  ;;  %1287 = vmatprep.mubr.bf16.mxu1 %v3881_v63  ;;  %v4014_v6 = vld [vmem:[#allocation5 + $0xf8] ss:$28 sps:$4 sm:$0xff]  }
  0x93   :  { %1179 = vmatpush2.bf16.msra.mxu0 %v3572_v11  ;;  %v3631_v11 = vld [vmem:[#allocation2 + $0x444] ss:$8 sps:$4 sm:$0xff]  }
  0x94   :  { %2326 = vmatpush1.bf16.msra.mxu1 %v3569_v8  ;;  %1180 = vmatprep.subr.bf16.mxu0 %v3580_v13  ;;  %v3625_v8 = vld [vmem:[#allocation2 + $0x490] ss:$8 sps:$4 sm:$0xff]  }
  0x95   :  { %2327 = vmatprep.subr.bf16.mxu1 %v3577_v12  ;;  %v3634_v12 = vld [vmem:[#allocation2 + $0x484] ss:$8 sps:$4 sm:$0xff]   ;;  %v4016_v13 = vld [vmem:[#allocation5 + $0xbc] ss:$28 sps:$4 sm:$0xff]  }
  0x97   :  { %3201 = vmatmul.mubr.msk.bf16.gmra.mxu1 %vm947_vm0, %v3985_v18  ;;  %1181 = vmatpush2.bf16.msra.mxu0 %v3578_v15  ;;  %v3632_v15 = vld [vmem:[#allocation2 + $0x480] ss:$8 sps:$4 sm:$0xff]  }
  0x98   :  { %2328 = vmatpush1.bf16.msra.mxu1 %v3575_v14  ;;  %1182 = vmatprep.subr.bf16.mxu0 %v3586_v22  ;;  %v3629_v14 = vld [vmem:[#allocation2 + $0x440] ss:$8 sps:$4 sm:$0xff]   ;;  %v3643_v22 = vld [vmem:[#allocation2 + $0x474] ss:$8 sps:$4 sm:$0xff]  }
  0x99   :  { %2329 = vmatprep.subr.bf16.mxu1 %v3583_v19  ;;  %1297 = vmatprep.mubr.bf16.mxu1 %v3881_v63  ;;  %v3639_v19 = vld [vmem:[#allocation2 + $0x434] ss:$8 sps:$4 sm:$0xff]  }
  0x9b   :  { %1183 = vmatpush2.bf16.msra.mxu0 %v3584_v24  ;;  %v4025_v24 = vld [vmem:[#allocation5 + $0x130] ss:$28 sps:$4 sm:$0xff]  }
  0x9c   :  { %2330 = vmatpush1.bf16.msra.mxu1 %v3581_v23  ;;  %2416 = vmatprep.subr.bf16.mxu0 %v3595_v28  ;;  %v4022_v23 = vld [vmem:[#allocation5 + $0xb8] ss:$28 sps:$4 sm:$0xff]  }
  0x9d   :  { %2331 = vmatprep.subr.bf16.mxu1 %v3592_v26  ;;  %v3637_v26 = vld [vmem:[#allocation2 + $0x430] ss:$8 sps:$4 sm:$0xff]  }
  0x9e   :  { %1185 = vmatmul.mubr.bf16.vlgmr.msra.gmra.mxu0 %v3989_v29  ;;  %v3641_v28 = vld [vmem:[#allocation2 + $0x470] ss:$8 sps:$4 sm:$0xff]  }
  0x9f   :  { %3202 = vmatmul.mubr.msk.bf16.gmra.mxu1 %vm947_vm0, %v3992_v33  ;;  %2417 = vmatpush1.bf16.msra.mxu0 %v3593_v34  ;;  %v3650_v34 = vld [vmem:[#allocation2 + $0x464] ss:$8 sps:$4 sm:$0xff]  }
  0xa0   :  { %2332 = vmatpush1.bf16.msra.mxu1 %v3590_v30  ;;  %2418 = vmatprep.subr.bf16.mxu0 %v3602_v36  ;;  %v3647_v30 = vld [vmem:[#allocation2 + $0x424] ss:$8 sps:$4 sm:$0xff]   ;;  %v3645_v36 = vld [vmem:[#allocation2 + $0x420] ss:$8 sps:$4 sm:$0xff]  }
  0xa1   :  { %2333 = vmatprep.subr.bf16.mxu1 %v3599_v35  ;;  %1194 = vmatprep.mubr.bf16.mxu0 %v3994_v37  ;;  %v4027_v35 = vld [vmem:[#allocation5 + $0xf4] ss:$28 sps:$4 sm:$0xff]  }
  0xa2   :  { %1307 = vmatprep.mubr.bf16.mxu1 %v3881_v63 }
  0xa3   :  { %2419 = vmatpush1.bf16.msra.mxu0 %v3600_v41  ;;  %v3655_v41 = vld [vmem:[#allocation2 + $0x414] ss:$8 sps:$4 sm:$0xff]  }
  0xa4   :  { %2334 = vmatpush1.bf16.msra.mxu1 %v3597_v40  ;;  %2420 = vmatprep.subr.bf16.mxu0 %v3611_v45  ;;  %v3648_v40 = vld [vmem:[#allocation2 + $0x460] ss:$8 sps:$4 sm:$0xff]   ;;  %v4034_v45 = vld [vmem:[#allocation5 + $0xf0] ss:$28 sps:$4 sm:$0xff]  }
  0xa5   :  { %2335 = vmatprep.subr.bf16.mxu1 %v3607_v44  ;;  %v3659_v44 = vld [vmem:[#allocation2 + $0x554] ss:$8 sps:$4 sm:$0xff]  }
  0xa6   :  { %1195 = vmatmul.mubr.bf16.gmra.mxu0 %v4000_v46 }
  0xa7   :  { %3203 = vmatmul.mubr.msk.bf16.gmra.mxu1 %vm947_vm0, %v4003_v47  ;;  %2421 = vmatpush1.bf16.msra.mxu0 %v3609_v52  ;;  %v3657_v52 = vld [vmem:[#allocation2 + $0x550] ss:$8 sps:$4 sm:$0xff]  }
  0xa8   :  { %2336 = vmatpush1.bf16.msra.mxu1 %v3605_v51  ;;  %2422 = vmatprep.subr.bf16.mxu0 %v3618_v56  ;;  %v3653_v51 = vld [vmem:[#allocation2 + $0x410] ss:$8 sps:$4 sm:$0xff]   ;;  %v3666_v56 = vld [vmem:[#allocation2 + $0x544] ss:$8 sps:$4 sm:$0xff]  }
  0xa9   :  { %2337 = vmatprep.subr.bf16.mxu1 %v3615_v55  ;;  %1204 = vmatprep.mubr.bf16.mxu0 %v4005_v59  ;;  %v3663_v55 = vld [vmem:[#allocation2 + $0x404] ss:$8 sps:$4 sm:$0xff]  }
  0xaa   :  { %1317 = vmatprep.mubr.bf16.mxu1 %v3881_v63 }
  0xab   :  { %2423 = vmatpush1.bf16.msra.mxu0 %v3616_v62  ;;  %v3661_v62 = vld [vmem:[#allocation2 + $0x400] ss:$8 sps:$4 sm:$0xff]  }
  0xac   :  { %2338 = vmatpush1.bf16.msra.mxu1 %v3613_v60  ;;  %2424 = vmatprep.subr.bf16.mxu0 %v3627_v1  ;;  %v4036_v60 = vld [vmem:[#allocation5 + $0x12c] ss:$28 sps:$4 sm:$0xff]   ;;  %v3675_v1 = vld [vmem:[#allocation2 + $0x534] ss:$8 sps:$4 sm:$0xff]  }
  0xad   :  { %2339 = vmatprep.subr.bf16.mxu1 %v3623_v0  ;;  %v3664_v0 = vld [vmem:[#allocation2 + $0x540] ss:$8 sps:$4 sm:$0xff]  }
  0xae   :  { %1205 = vmatmul.mubr.bf16.gmra.mxu0 %v4011_v3 }
  0xaf   :  { %3204 = vmatmul.mubr.msk.bf16.gmra.mxu1 %vm947_vm0, %v4014_v6  ;;  %2425 = vmatpush1.bf16.msra.mxu0 %v3625_v8  ;;  %v3669_v8 = vld [vmem:[#allocation2 + $0x3f0] ss:$8 sps:$4 sm:$0xff]  }
  0xb0   :  { %2340 = vmatpush2.bf16.msra.mxu1 %v3621_v7  ;;  %2426 = vmatprep.subr.bf16.mxu0 %v3634_v12  ;;  %v4040_v7 = vld [vmem:[#allocation5 + $0x128] ss:$28 sps:$4 sm:$0xff]  }
  0xb1   :  { %2341 = vmatprep.subr.bf16.mxu1 %v3631_v11  ;;  %1214 = vmatprep.mubr.bf16.mxu0 %v4016_v13  ;;  %v3673_v11 = vld [vmem:[#allocation2 + $0x530] ss:$8 sps:$4 sm:$0xff]   ;;  %v3678_v12 = vld [vmem:[#allocation2 + $0x3e4] ss:$8 sps:$4 sm:$0xff]  }
  0xb2   :  { %1327 = vmatprep.mubr.bf16.mxu1 %v3881_v63 }
  0xb3   :  { %2427 = vmatpush1.bf16.msra.mxu0 %v3632_v15  ;;  %v3676_v15 = vld [vmem:[#allocation2 + $0x3e0] ss:$8 sps:$4 sm:$0xff]  }
  0xb4   :  { %2342 = vmatpush2.bf16.msra.mxu1 %v3629_v14  ;;  %2428 = vmatprep.subr.bf16.mxu0 %v3643_v22  ;;  %v3681_v14 = vld [vmem:[#allocation2 + $0x524] ss:$8 sps:$4 sm:$0xff]   ;;  %v3684_v22 = vld [vmem:[#allocation2 + $0x5d4] ss:$8 sps:$4 sm:$0xff]  }
  0xb5   :  { %2343 = vmatprep.subr.bf16.mxu1 %v3639_v19  ;;  %v3679_v19 = vld [vmem:[#allocation2 + $0x520] ss:$8 sps:$4 sm:$0xff]  }
  0xb6   :  { %1215 = vmatmul.mubr.bf16.gmra.mxu0 %v4022_v23 }
  0xb7   :  { %3205 = vmatmul.mubr.msk.bf16.gmra.mxu1 %vm947_vm0, %v4025_v24  ;;  %2429 = vmatpush1.bf16.msra.mxu0 %v3641_v28  ;;  %v3808_v28 = vld [vmem:[#allocation5 + $0xc] ss:$28 sps:$4 sm:$0xff]  }
  0xb8   :  { %2344 = vmatpush2.bf16.msra.mxu1 %v3637_v26  ;;  %2430 = vmatprep.subr.bf16.mxu0 %v3650_v34  ;;  %v3687_v26 = vld [vmem:[#allocation2 + $0x514] ss:$8 sps:$4 sm:$0xff]   ;;  %v3685_v34 = vld [vmem:[#allocation2 + $0x510] ss:$8 sps:$4 sm:$0xff]  }
  0xb9   :  { %2345 = vmatprep.subr.bf16.mxu1 %v3647_v30  ;;  %1224 = vmatprep.mubr.bf16.mxu0 %v4027_v35  ;;  %v3682_v30 = vld [vmem:[#allocation2 + $0x5d0] ss:$8 sps:$4 sm:$0xff]  }
  0xba   :  { %2355 = vmatprep.mubr.bf16.mxu1 %v3907_v49  ;;  %v3671_v49 = vld [vmem:[#allocation2 + $0x3f4] ss:$8 sps:$4 sm:$0xff]  }
  0xbb   :  { %2431 = vmatpush1.bf16.msra.mxu0 %v3648_v40  ;;  %v3693_v40 = vld [vmem:[#allocation2 + $0x504] ss:$8 sps:$4 sm:$0xff]  }
  0xbc   :  { %2346 = vmatpush2.bf16.msra.mxu1 %v3645_v36  ;;  %2432 = vmatprep.subr.bf16.mxu0 %v3659_v44  ;;  %v3690_v36 = vld [vmem:[#allocation2 + $0x5c4] ss:$8 sps:$4 sm:$0xff]   ;;  %v3691_v44 = vld [vmem:[#allocation2 + $0x500] ss:$8 sps:$4 sm:$0xff]  }
  0xbd   :  { %2347 = vmatprep.subr.bf16.mxu1 %v3655_v41  ;;  %v3688_v41 = vld [vmem:[#allocation2 + $0x5c0] ss:$8 sps:$4 sm:$0xff]  }
  0xbe   :  { %1225 = vmatmul.mubr.bf16.gmra.mxu0 %v4034_v45 }
  0xbf   :  { %2433 = vmatpush2.bf16.msra.mxu0 %v3657_v52  ;;  %1234 = vmatprep.mubr.bf16.mxu0 %v4036_v60  ;;  %v3699_v52 = vld [vmem:[#allocation2 + $0x4f4] ss:$8 sps:$4 sm:$0xff]  }
  0xc0   :  { %2348 = vmatpush2.bf16.msra.mxu1 %v3653_v51  ;;  %2434 = vmatprep.subr.bf16.mxu0 %v3666_v56  ;;  %v3696_v51 = vld [vmem:[#allocation2 + $0x5b4] ss:$8 sps:$4 sm:$0xff]   ;;  %v3697_v56 = vld [vmem:[#allocation2 + $0x4f0] ss:$8 sps:$4 sm:$0xff]  }
  0xc1   :  { %2349 = vmatprep.subr.bf16.mxu1 %v3663_v55  ;;  %v3694_v55 = vld [vmem:[#allocation2 + $0x5b0] ss:$8 sps:$4 sm:$0xff]  }
  0xc3   :  { %2435 = vmatpush2.bf16.msra.mxu0 %v3664_v0  ;;  %v3705_v0 = vld [vmem:[#allocation2 + $0x4e4] ss:$8 sps:$4 sm:$0xff]  }
  0xc4   :  { %2350 = vmatpush2.bf16.msra.mxu1 %v3661_v62  ;;  %2436 = vmatprep.subr.bf16.mxu0 %v3675_v1  ;;  %v3702_v62 = vld [vmem:[#allocation2 + $0x5a4] ss:$8 sps:$4 sm:$0xff]   ;;  %v3708_v1 = vld [vmem:[#allocation2 + $0x594] ss:$8 sps:$4 sm:$0xff]  }
  0xc5   :  { %2351 = vmatprep.subr.bf16.mxu1 %v3671_v49  ;;  %v3703_v49 = vld [vmem:[#allocation2 + $0x4e0] ss:$8 sps:$4 sm:$0xff]  }
  0xc6   :  { %1235 = vmatmul.mubr.bf16.gmra.mxu0 %v4040_v7 }
  0xc7   :  { %2437 = vmatpush2.bf16.msra.mxu0 %v3673_v11  ;;  %2448 = vmatprep.mubr.bf16.mxu0 %v3808_v28  ;;  %v3709_v11 = vld [vmem:[#allocation2 + $0x6b0] ss:$8 sps:$4 sm:$0xff]   ;;  %v3721_v28 = vld [vmem:[#allocation2 + $0x560] ss:$8 sps:$4 sm:$0xff]  }
  0xc8   :  { %2352 = vmatpush2.bf16.msra.mxu1 %v3669_v8  ;;  %2438 = vmatprep.subr.bf16.mxu0 %v3681_v14  ;;  %v3711_v8 = vld [vmem:[#allocation2 + $0x6b4] ss:$8 sps:$4 sm:$0xff]   ;;  %v3720_v14 = vld [vmem:[#allocation2 + $0x6a4] ss:$8 sps:$4 sm:$0xff]  }
  0xc9   :  { %2353 = vmatprep.subr.bf16.mxu1 %v3678_v12  ;;  %v3714_v12 = vld [vmem:[#allocation2 + $0x584] ss:$8 sps:$4 sm:$0xff]  }
  0xcb   :  { %2439 = vmatpush2.bf16.msra.mxu0 %v3679_v19  ;;  %v3729_v19 = vld [vmem:[#allocation2 + $0x694] ss:$8 sps:$4 sm:$0xff]  }
  0xcc   :  { %2354 = vmatpush2.bf16.msra.mxu1 %v3676_v15  ;;  %2440 = vmatprep.subr.bf16.mxu0 %v3687_v26  ;;  %v3718_v15 = vld [vmem:[#allocation2 + $0x6a0] ss:$8 sps:$4 sm:$0xff]   ;;  %v3723_v26 = vld [vmem:[#allocation2 + $0x564] ss:$8 sps:$4 sm:$0xff]  }
  0xcd   :  { %2509 = vmatprep.subr.bf16.mxu1 %v3684_v22  ;;  %v3715_v22 = vld [vmem:[#allocation2 + $0x570] ss:$8 sps:$4 sm:$0xff]  }
  0xcf   :  { %2356 = vmatmul.mubr.bf16.vlgmr.msra.gmra.mxu1 %v3910_v4  ;;  %2441 = vmatpush2.bf16.msra.mxu0 %v3685_v34  ;;  %v3700_v4 = vld [vmem:[#allocation2 + $0x5a0] ss:$8 sps:$4 sm:$0xff]   ;;  %v3724_v34 = vld [vmem:[#allocation2 + $0x650] ss:$8 sps:$4 sm:$0xff]  }
  0xd0   :  { %2510 = vmatpush1.bf16.msra.mxu1 %v3682_v30  ;;  %2442 = vmatprep.subr.bf16.mxu0 %v3693_v40  ;;  %v3747_v30 = vld [vmem:[#allocation2 + $0x674] ss:$8 sps:$4 sm:$0xff]   ;;  %v3754_v40 = vld [vmem:[#allocation2 + $0x660] ss:$8 sps:$4 sm:$0xff]  }
  0xd1   :  { %2511 = vmatprep.subr.bf16.mxu1 %v3690_v36  ;;  %2365 = vmatprep.mubr.bf16.mxu1 %v3914_v9  ;;  %v3706_v9 = vld [vmem:[#allocation2 + $0x590] ss:$8 sps:$4 sm:$0xff]   ;;  %v3732_v36 = vld [vmem:[#allocation2 + $0x644] ss:$8 sps:$4 sm:$0xff]  }
  0xd3   :  { %2443 = vmatpush2.bf16.msra.mxu0 %v3691_v44  ;;  %v3741_v44 = vld [vmem:[#allocation2 + $0x624] ss:$8 sps:$4 sm:$0xff]  }
  0xd4   :  { %2512 = vmatpush1.bf16.msra.mxu1 %v3688_v41  ;;  %2444 = vmatprep.subr.bf16.mxu0 %v3699_v52  ;;  %v3733_v41 = vld [vmem:[#allocation2 + $0x630] ss:$8 sps:$4 sm:$0xff]  }
  0xd5   :  { %2513 = vmatprep.subr.bf16.mxu1 %v3696_v51  ;;  %v3748_v51 = vld [vmem:[#allocation2 + $0x600] ss:$8 sps:$4 sm:$0xff]  }
  0xd7   :  { %2366 = vmatmul.mubr.bf16.gmra.mxu1 %v3922_v16  ;;  %2445 = vmatpush2.bf16.msra.mxu0 %v3697_v56  ;;  %v3712_v16 = vld [vmem:[#allocation2 + $0x580] ss:$8 sps:$4 sm:$0xff]  }
  0xd8   :  { %2514 = vmatpush1.bf16.msra.mxu1 %v3694_v55  ;;  %2446 = vmatprep.subr.bf16.mxu0 %v3705_v0 }
  0xd9   :  { %2515 = vmatprep.subr.bf16.mxu1 %v3702_v62  ;;  %2375 = vmatprep.mubr.bf16.mxu1 %v3926_v20  ;;  %v3717_v20 = vld [vmem:[#allocation2 + $0x574] ss:$8 sps:$4 sm:$0xff]  }
  0xdb   :  { %2447 = vmatpush2.bf16.msra.mxu0 %v3703_v49 }
  0xdc   :  { %2516 = vmatpush1.bf16.msra.mxu1 %v3700_v4  ;;  %2606 = vmatprep.subr.bf16.mxu0 %v3711_v8 }
  0xdd   :  { %2517 = vmatprep.subr.bf16.mxu1 %v3708_v1 }
  0xde   :  { %2449 = vmatmul.mubr.bf16.vlgmr.msra.gmra.mxu0 %v3912_v5  ;;  %v3727_v5 = vld [vmem:[#allocation2 + $0x690] ss:$8 sps:$4 sm:$0xff]  }
  0xdf   :  { %2376 = vmatmul.mubr.bf16.gmra.mxu1 %v3934_v25  ;;  %2607 = vmatpush1.bf16.msra.mxu0 %v3709_v11  ;;  %v3738_v25 = vld [vmem:[#allocation2 + $0x684] ss:$8 sps:$4 sm:$0xff]  }
  0xe0   :  { %2518 = vmatpush1.bf16.msra.mxu1 %v3706_v9  ;;  %2458 = vmatprep.mubr.bf16.mxu0 %v3916_v10  ;;  %v3726_v10 = vld [vmem:[#allocation2 + $0x654] ss:$8 sps:$4 sm:$0xff]  }
  0xe1   :  { %2519 = vmatprep.subr.bf16.mxu1 %v3714_v12  ;;  %2608 = vmatprep.subr.bf16.mxu0 %v3720_v14 }
  0xe2   :  { %2385 = vmatprep.mubr.bf16.mxu1 %v3938_v31  ;;  %v3736_v31 = vld [vmem:[#allocation2 + $0x680] ss:$8 sps:$4 sm:$0xff]  }
  0xe3   :  { %2609 = vmatpush1.bf16.msra.mxu0 %v3718_v15 }
  0xe4   :  { %2520 = vmatpush1.bf16.msra.mxu1 %v3712_v16  ;;  %2610 = vmatprep.subr.bf16.mxu0 %v3729_v19 }
  0xe5   :  { %2521 = vmatprep.subr.bf16.mxu1 %v3717_v20 }
  0xe6   :  { %2459 = vmatmul.mubr.bf16.gmra.mxu0 %v3924_v17  ;;  %v3745_v17 = vld [vmem:[#allocation2 + $0x670] ss:$8 sps:$4 sm:$0xff]  }
  0xe7   :  { %2386 = vmatmul.mubr.bf16.gmra.mxu1 %v3946_v38  ;;  %2468 = vmatprep.mubr.bf16.mxu0 %v3928_v21  ;;  %v3756_v21 = vld [vmem:[#allocation2 + $0x664] ss:$8 sps:$4 sm:$0xff]   ;;  %v3730_v38 = vld [vmem:[#allocation2 + $0x640] ss:$8 sps:$4 sm:$0xff]  }
  0xe8   :  { %2522 = vmatpush1.bf16.msra.mxu1 %v3715_v22  ;;  %2611 = vmatpush1.bf16.msra.mxu0 %v3727_v5 }
  0xe9   :  { %2523 = vmatprep.subr.bf16.mxu1 %v3723_v26  ;;  %2395 = vmatprep.mubr.bf16.mxu1 %v3950_v42  ;;  %v3735_v42 = vld [vmem:[#allocation2 + $0x634] ss:$8 sps:$4 sm:$0xff]  }
  0xea   :  { %2612 = vmatprep.subr.bf16.mxu0 %v3738_v25 }
  0xec   :  { %2524 = vmatpush1.bf16.msra.mxu1 %v3721_v28  ;;  %2613 = vmatpush1.bf16.msra.mxu0 %v3736_v31 }
  0xed   :  { %2525 = vmatprep.subr.bf16.mxu1 %v3726_v10  ;;  %2614 = vmatprep.subr.bf16.mxu0 %v3747_v30 }
  0xee   :  { %2469 = vmatmul.mubr.bf16.gmra.mxu0 %v3936_v27  ;;  %v3739_v27 = vld [vmem:[#allocation2 + $0x620] ss:$8 sps:$4 sm:$0xff]  }
  0xef   :  { %2396 = vmatmul.mubr.bf16.gmra.mxu1 %v3958_v48  ;;  %2478 = vmatprep.mubr.bf16.mxu0 %v3940_v32  ;;  %v3744_v32 = vld [vmem:[#allocation2 + $0x614] ss:$8 sps:$4 sm:$0xff]   ;;  %v3742_v48 = vld [vmem:[#allocation2 + $0x610] ss:$8 sps:$4 sm:$0xff]  }
  0xf0   :  { %2526 = vmatpush2.bf16.msra.mxu1 %v3724_v34  ;;  %2405 = vmatprep.mubr.bf16.mxu1 %v3962_v53  ;;  %v3750_v53 = vld [vmem:[#allocation2 + $0x604] ss:$8 sps:$4 sm:$0xff]  }
  0xf1   :  { %2527 = vmatprep.subr.bf16.mxu1 %v3732_v36  ;;  %2615 = vmatpush1.bf16.msra.mxu0 %v3745_v17 }
  0xf2   :  { %2616 = vmatprep.subr.bf16.mxu0 %v3756_v21 }
  0xf4   :  { %2528 = vmatpush2.bf16.msra.mxu1 %v3730_v38 }
  0xf5   :  { %2529 = vmatprep.subr.bf16.mxu1 %v3735_v42  ;;  %2617 = vmatpush1.bf16.msra.mxu0 %v3754_v40 }
  0xf6   :  { %2479 = vmatmul.mubr.bf16.gmra.mxu0 %v3948_v39  ;;  %v3753_v39 = vld [vmem:[#allocation2 + $0x5f4] ss:$8 sps:$4 sm:$0xff]  }
  0xf7   :  { %2406 = vmatmul.mubr.bf16.gmra.mxu1 %v3970_v57  ;;  %2488 = vmatprep.mubr.bf16.mxu0 %v3952_v43  ;;  %v3751_v57 = vld [vmem:[#allocation2 + $0x5f0] ss:$8 sps:$4 sm:$0xff]   ;;  %v3759_v43 = vld [vmem:[#allocation2 + $0x5e4] ss:$8 sps:$4 sm:$0xff]  }
  0xf8   :  { %2530 = vmatpush2.bf16.msra.mxu1 %v3733_v41  ;;  %2541 = vmatprep.mubr.bf16.mxu1 %v3974_v61  ;;  %v3757_v61 = vld [vmem:[#allocation2 + $0x5e0] ss:$8 sps:$4 sm:$0xff]  }
  0xf9   :  { %2531 = vmatprep.subr.bf16.mxu1 %v3741_v44 }
  0xfc   :  { %2532 = vmatpush2.bf16.msra.mxu1 %v3739_v27 }
  0xfd   :  { %2533 = vmatprep.subr.bf16.mxu1 %v3744_v32 }
  0xfe   :  { %2489 = vmatmul.mubr.bf16.gmra.mxu0 %v3960_v50 }
  0xff   :  { %2498 = vmatprep.mubr.bf16.mxu0 %v3964_v54 }
 0x100   :  { %2534 = vmatpush2.bf16.msra.mxu1 %v3742_v48 }
 0x101   :  { %2535 = vmatprep.subr.bf16.mxu1 %v3750_v53 }
 0x104   :  { %2536 = vmatpush2.bf16.msra.mxu1 %v3748_v51 }
 0x105   :  { %2537 = vmatprep.subr.bf16.mxu1 %v3753_v39 }
 0x106   :  { %2499 = vmatmul.mubr.bf16.gmra.mxu0 %v3972_v58 }
 0x107   :  { %2634 = vmatprep.mubr.bf16.mxu0 %v3881_v63 }
 0x108   :  { %2538 = vmatpush2.bf16.msra.mxu1 %v3751_v57 }
 0x109   :  { %2539 = vmatprep.subr.bf16.mxu1 %v3759_v43 }
 0x10c   :  { %2540 = vmatpush2.bf16.msra.mxu1 %v3757_v61 }
 0x10e   :  { %3326 = vmatmul.mubr.msk.bf16.vlgmr.msra.gmra.mxu0 %vm947_vm0, %v3980_v2 }
 0x10f   :  { %2542 = vmatmul.mubr.bf16.vlgmr.msra.gmra.mxu1 %v3989_v29  ;;  %2644 = vmatprep.mubr.bf16.mxu0 %v3881_v63 }
 0x110   :  { %2551 = vmatprep.mubr.bf16.mxu1 %v3994_v37 }
 0x116   :  { %3327 = vmatmul.mubr.msk.bf16.gmra.mxu0 %vm947_vm0, %v3985_v18 }
 0x117   :  { %2552 = vmatmul.mubr.bf16.gmra.mxu1 %v4000_v46  ;;  %2654 = vmatprep.mubr.bf16.mxu0 %v3881_v63 }
 0x118   :  { %2561 = vmatprep.mubr.bf16.mxu1 %v4005_v59 }
 0x11e   :  { %v4078_v50 = vpop.f32.mrf.mxu0  ;;  %3328 = vmatmul.mubr.msk.bf16.gmra.mxu0 %vm947_vm0, %v3992_v33 }
 0x11f   :  { %2562 = vmatmul.mubr.bf16.gmra.mxu1 %v4011_v3  ;;  %v4080_v54 = vpop.f32.mrf.mxu1  ;;  %2664 = vmatprep.mubr.bf16.mxu0 %v3881_v63 }
 0x120   :  { %2571 = vmatprep.mubr.bf16.mxu1 %v4016_v13  ;;  %v4086_v58 = vpop.f32.mrf.mxu0  ;;  %v1094_v32 = vadd.f32 %v4080_v54, %v4078_v50 }
 0x121   :  { %v4088_v2 = vpop.f32.mrf.mxu1 }
 0x122   :  { %v4090_v18 = vpop.f32.mrf.mxu0  ;;  %v1096_v51 = vadd.f32 %v4088_v2, %v4086_v58 }
 0x123   :  { %v4092_v29 = vpop.f32.mrf.mxu1 }
 0x124   :  { %v4094_v37 = vpop.f32.mrf.mxu0  ;;  %v1098_v61 = vadd.f32 %v4092_v29, %v4090_v18 }
 0x125   :  { %v4096_v46 = vpop.f32.mrf.mxu1 }
 0x126   :  { %v4099_v59 = vpop.f32.mrf.mxu0  ;;  %3329 = vmatmul.mubr.msk.bf16.gmra.mxu0 %vm947_vm0, %v4003_v47 }
 0x127   :  { %2572 = vmatmul.mubr.bf16.gmra.mxu1 %v4022_v23  ;;  %v4101_v33 = vpop.f32.mrf.mxu1  ;;  %2674 = vmatprep.mubr.bf16.mxu0 %v3881_v63 }
 0x128   :  { %2581 = vmatprep.mubr.bf16.mxu1 %v4027_v35  ;;  %v4107_v3 = vpop.f32.mrf.mxu0  ;;  %v1104_v58 = vadd.f32 %v4101_v33, %v4099_v59 }
 0x129   :  { %v4109_v13 = vpop.f32.mrf.mxu1 }
 0x12a   :  { %v4111_v52 = vpop.f32.mrf.mxu0 }
 0x12b   :  { %v4113_v55 = vpop.f32.mrf.mxu1 }
 0x12c   :  { %v4115_v23 = vpop.f32.mrf.mxu0 }
 0x12d   :  { %v4117_v56 = vpop.f32.mrf.mxu1 }
 0x12e   :  { %v4120_v62 = vpop.f32.mrf.mxu0  ;;  %3330 = vmatmul.mubr.msk.bf16.gmra.mxu0 %vm947_vm0, %v4014_v6 }
 0x12f   :  { %2582 = vmatmul.mubr.bf16.gmra.mxu1 %v4034_v45  ;;  %v4122_v47 = vpop.f32.mrf.mxu1  ;;  %2684 = vmatprep.mubr.bf16.mxu0 %v3881_v63 }
 0x130   :  { %2591 = vmatprep.mubr.bf16.mxu1 %v4036_v60  ;;  %v4128_v35 = vpop.f32.mrf.mxu0 }
 0x131   :  { %v4130_v0 = vpop.f32.mrf.mxu1 }
 0x132   :  { %v4132_v4 = vpop.f32.mrf.mxu0 }
 0x133   :  { %v4134_v49 = vpop.f32.mrf.mxu1 }
 0x134   :  { %v4136_v45 = vpop.f32.mrf.mxu0 }
 0x135   :  { %v4138_v1 = vpop.f32.mrf.mxu1 }
 0x136   :  { %v4141_v8 = vpop.f32.mrf.mxu0  ;;  %3331 = vmatmul.mubr.msk.bf16.gmra.mxu0 %vm947_vm0, %v4025_v24 }
 0x137   :  { %2592 = vmatmul.mubr.bf16.gmra.mxu1 %v4040_v7  ;;  %v4143_v6 = vpop.f32.mrf.mxu1 }
 0x138   :  { %v4147_v63 = vpop.f32.mrf.mxu0 }
 0x139   :  { %v4149_v60 = vpop.f32.mrf.mxu1 }
 0x13a   :  { %v4151_v9 = vpop.f32.mrf.mxu0 }
 0x13b   :  { %v4153_v11 = vpop.f32.mrf.mxu1 }
 0x13c   :  { %v4155_v12 = vpop.f32.mrf.mxu0 }
 0x13d   :  { %v4157_v14 = vpop.f32.mrf.mxu1 }
 0x13e   :  { %v4161_v16 = vpop.f32.mrf.mxu0 }
 0x13f   :  { %v4159_v7 = vpop.f32.mrf.mxu1 }
 0x140   :  { %v4167_v24 = vpop.f32.mrf.mxu0 }
 0x141   :  { %v4163_v15 = vpop.f32.mrf.mxu1 }
 0x142   :  { %v4173_v26 = vpop.f32.mrf.mxu0 }
 0x143   :  { %v4165_v20 = vpop.f32.mrf.mxu1 }
 0x144   :  { %v4179_v28 = vpop.f32.mrf.mxu0 }
 0x145   :  { %v4169_v19 = vpop.f32.mrf.mxu1 }
 0x146   :  { %v4183_v30 = vpop.f32.mrf.mxu0 }
 0x147   :  { %v4171_v22 = vpop.f32.mrf.mxu1 }
 0x148   :  { %v4185_v17 = vpop.f32.mrf.mxu0 }
 0x149   :  { %v4175_v5 = vpop.f32.mrf.mxu1 }
 0x14a   :  { %4833 = vst [vmem:[#allocation11_spill] sm:$0xff] %v4175_v5  ;;  %v4187_v42 = vpop.f32.mrf.mxu0 }
 0x14b   :  { %v4177_v25 = vpop.f32.mrf.mxu1  ;;  %4836 = vst [vmem:[#allocation14_spill] sm:$0xff] %v4187_v42 }
 0x14c   :  { %4834 = vst [vmem:[#allocation12_spill] sm:$0xff] %v4177_v25  ;;  %v4191_v44 = vpop.f32.mrf.mxu0 }
 0x14d   :  { %v4181_v10 = vpop.f32.mrf.mxu1  ;;  %4837 = vst [vmem:[#allocation15_spill] sm:$0xff] %v4191_v44  ;;  %v1100_v44 = vadd.f32 %v4096_v46, %v4094_v37 }
 0x14e   :  { %4835 = vst [vmem:[#allocation13_spill] sm:$0xff] %v4181_v10 }
 0x14f   :  { %v1279_v31 = vpop.f32.mrf.mxu1 }
 0x151   :  { %v1281_v34 = vpop.f32.mrf.mxu1 }
 0x153   :  { %v1283_v36 = vpop.f32.mrf.mxu1 }
 0x155   :  { %v1285_v21 = vpop.f32.mrf.mxu1 }
 0x157   :  { %v1289_v38 = vpop.f32.mrf.mxu1 }
 0x159   :  { %v1291_v40 = vpop.f32.mrf.mxu1 }
 0x15b   :  { %v4189_v41 = vpop.f32.mrf.mxu1 }
 0x15d   :  { %v1295_v27 = vpop.f32.mrf.mxu1 }
 0x15e   :  { %v1186_v48 = vpop.f32.mrf.mxu0 }
 0x15f   :  { %v4195_v53 = vpop.f32.mrf.mxu1  ;;  %v1187_v39 = vadd.f32 %v1186_v48, %v1094_v32 }
 0x160   :  { %v1188_v57 = vpop.f32.mrf.mxu0 }
 0x161   :  { %v1301_v43 = vpop.f32.mrf.mxu1  ;;  %v1189_v10 = vadd.f32 %v1188_v57, %v1096_v51  ;;  %v4205_v50 = vadd.f32 %v1279_v31, %v1187_v39  ;;  %v1110_v57 = vadd.f32 %v4117_v56, %v4115_v23  ;;  %v1116_v56 = vadd.f32 %v4130_v0, %v4128_v35 }
 0x162   :  { %v1190_v25 = vpop.f32.mrf.mxu0  ;;  %v1118_v0 = vadd.f32 %v4134_v49, %v4132_v4 }
 0x163   :  { %v4201_v42 = vpop.f32.mrf.mxu1  ;;  %4838 = vst [vmem:[#allocation16_spill] sm:$0xff] %v4205_v50  ;;  %v4207_v54 = vadd.f32 %v1281_v34, %v1189_v10  ;;  %v1191_v5 = vadd.f32 %v1190_v25, %v1098_v61  ;;  %v1106_v25 = vadd.f32 %v4109_v13, %v4107_v3  ;;  %v1386_v33 = vmul.f32 %v4205_v50, %v4205_v50 }
 0x164   :  { %v1192_v2 = vpop.f32.mrf.mxu0  ;;  %v1108_v3 = vadd.f32 %v4113_v55, %v4111_v52 }
 0x165   :  { %4839 = vst [vmem:[#allocation17_spill] sm:$0xff] %v4207_v54  ;;  %v4211_v32 = vpop.f32.mrf.mxu1  ;;  %v4213_v48 = vadd.f32 %v1283_v36, %v1191_v5  ;;  %v1193_v18 = vadd.f32 %v1192_v2, %v1100_v44  ;;  %v1338_v29 = vadd.f32 %v4207_v54, %v4205_v50  ;;  %v1387_v37 = vmul.f32 %v4207_v54, %v4207_v54 }
 0x166   :  { %v1196_v46 = vpop.f32.mrf.mxu0 }
 0x167   :  { %4840 = vst [vmem:[#allocation18_spill] sm:$0xff] %v4213_v48  ;;  %v4219_v31 = vpop.f32.mrf.mxu1  ;;  %v4223_v10 = vadd.f32 %v1285_v21, %v1193_v18  ;;  %v1197_v59 = vadd.f32 %v1196_v46, %v1104_v58  ;;  %1339 = vadd.xlane.f32.xlu0 %v1338_v29  ;;  %v1410_v44 = vadd.f32 %v1387_v37, %v1386_v33 }
 0x168   :  { %v1198_v5 = vpop.f32.mrf.mxu0  ;;  %v1388_v51 = vmul.f32 %v4213_v48, %v4213_v48  ;;  %v1114_v18 = vadd.f32 %v4122_v47, %v4120_v62 }
 0x169   :  { %4841 = vst [vmem:[#allocation19_spill] sm:$0xff] %v4223_v10  ;;  %v4227_v34 = vpop.f32.mrf.mxu1  ;;  %v1199_v36 = vadd.f32 %v1198_v5, %v1106_v25  ;;  %v1389_v39 = vmul.f32 %v4223_v10, %v4223_v10  ;;  %v4239_v61 = vadd.f32 %v1289_v38, %v1197_v59  ;;  %v1341_v55 = vadd.f32 %v4223_v10, %v4213_v48 }
 0x16a   :  { %v1200_v13 = vpop.f32.mrf.mxu0 }
 0x16b   :  { %v4235_v21 = vpop.f32.mrf.mxu1  ;;  %4842 = vst [vmem:[#allocation20_spill] sm:$0xff] %v4239_v61  ;;  %v4241_v58 = vadd.f32 %v1291_v40, %v1199_v36  ;;  %1411 = vadd.xlane.f32.xlu0 %v1410_v44  ;;  %v1413_v2 = vadd.f32 %v1389_v39, %v1388_v51  ;;  %v1201_v46 = vadd.f32 %v1200_v13, %v1108_v3 }
 0x16c   :  { %v1202_v29 = vpop.f32.mrf.mxu0  ;;  %v1390_v47 = vmul.f32 %v4239_v61, %v4239_v61  ;;  %v1124_v13 = vadd.f32 %v4143_v6, %v4141_v8 }
 0x16d   :  { %4843 = vst [vmem:[#allocation21_spill] sm:$0xff] %v4241_v58  ;;  %v4245_v37 = vpop.f32.mrf.mxu1  ;;  %v1203_v52 = vadd.f32 %v1202_v29, %v1110_v57  ;;  %1414 = vadd.xlane.f32.xlu1 %v1413_v2  ;;  %v1391_v23 = vmul.f32 %v4241_v58, %v4241_v58  ;;  %v1344_v62 = vadd.f32 %v4241_v58, %v4239_v61 }
 0x16e   :  { %v1206_v38 = vpop.f32.mrf.mxu0  ;;  %v4262_v5 = vadd.f32 %v4189_v41, %v1201_v46  ;;  %v1126_v2 = vadd.f32 %v4149_v60, %v4147_v63  ;;  %v1128_v63 = vadd.f32 %v4153_v11, %v4151_v9  ;;  %v1130_v60 = vadd.f32 %v4157_v14, %v4155_v12 }
 0x16f   :  { %v4253_v40 = vadd.f32 %v1295_v27, %v1203_v52  ;;  %v1207_v25 = vadd.f32 %v1206_v38, %v1114_v18  ;;  %1342 = vadd.xlane.f32.xlu0 %v1341_v55  ;;  %v4259_v33 = vpop.f32.mrf.mxu1  ;;  %v1416_v35 = vadd.f32 %v1391_v23, %v1390_v47  ;;  %v1120_v27 = vadd.f32 %v4138_v1, %v4136_v45 }
 0x170   :  { %v1208_v59 = vpop.f32.mrf.mxu0  ;;  %4845 = vst [vmem:[#allocation23_spill] sm:$0xff] %v4262_v5  ;;  %v1134_v9 = vadd.f32 %v4159_v7, %v4161_v16 }
 0x171   :  { %4844 = vst [vmem:[#allocation22_spill] sm:$0xff] %v4253_v40  ;;  %v1209_v36 = vadd.f32 %v1208_v59, %v1116_v56  ;;  %1345 = vadd.xlane.f32.xlu1 %v1344_v62  ;;  %v4269_v51 = vadd.f32 %v4195_v53, %v1207_v25  ;;  %v1347_v41 = vadd.f32 %v4253_v40, %v4262_v5  ;;  %v1321_v57 = vpop.f32.mrf.mxu1 }
 0x172   :  { %v1210_v44 = vpop.f32.mrf.mxu0  ;;  %v1393_v3 = vmul.f32 %v4253_v40, %v4253_v40  ;;  %v1392_v53 = vmul.f32 %v4262_v5, %v4262_v5 }
 0x173   :  { %4846 = vst [vmem:[#allocation24_spill] sm:$0xff] %v4269_v51  ;;  %v4271_v39 = vadd.f32 %v1301_v43, %v1209_v36  ;;  %1417 = vadd.xlane.f32.xlu0 %v1416_v35  ;;  %v1211_v4 = vadd.f32 %v1210_v44, %v1118_v0  ;;  %v1394_v46 = vmul.f32 %v4269_v51, %v4269_v51  ;;  %v1323_v23 = vpop.f32.mrf.mxu1 }
 0x174   :  { %v1212_v49 = vpop.f32.mrf.mxu0  ;;  %v1419_v29 = vadd.f32 %v1393_v3, %v1392_v53  ;;  %v1136_v35 = vadd.f32 %v4163_v15, %v4167_v24  ;;  %v1138_v15 = vadd.f32 %v4165_v20, %v4173_v26  ;;  %v1140_v24 = vadd.f32 %v4169_v19, %v4179_v28 }
 0x175   :  { %4847 = vst [vmem:[#allocation25_spill] sm:$0xff] %v4271_v39  ;;  %v1213_v45 = vadd.f32 %v1212_v49, %v1120_v27  ;;  %1348 = vadd.xlane.f32.xlu1 %v1347_v41  ;;  %v1350_v1 = vadd.f32 %v4271_v39, %v4269_v51  ;;  %v1395_v43 = vmul.f32 %v4271_v39, %v4271_v39  ;;  %v1325_v59 = vpop.f32.mrf.mxu1 }
 0x176   :  { %v1216_v18 = vpop.f32.mrf.mxu0  ;;  %v4293_v52 = vadd.f32 %v4201_v42, %v1211_v4 }
 0x177   :  { %v4288_v8 = vadd.f32 %v4211_v32, %v1213_v45  ;;  %v1217_v6 = vadd.f32 %v1216_v18, %v1124_v13  ;;  %1351 = vadd.xlane.f32.xlu0 %v1350_v1  ;;  %v1422_v38 = vadd.f32 %v1395_v43, %v1394_v46  ;;  %v1329_v3 = vpop.f32.mrf.mxu1  ;;  %v1144_v43 = vadd.f32 %v4171_v22, %v4183_v30  ;;  %v4856_v18 = vld [vmem:[#allocation11_spill] sm:$0xff] }
 0x178   :  { %4849 = vst [vmem:[#allocation27_spill] sm:$0xff] %v4293_v52  ;;  %v1218_v55 = vpop.f32.mrf.mxu0  ;;  %v1396_v12 = vmul.f32 %v4293_v52, %v4293_v52 }
 0x179   :  { %4848 = vst [vmem:[#allocation26_spill] sm:$0xff] %v4288_v8  ;;  %v1219_v56 = vadd.f32 %v1218_v55, %v1126_v2  ;;  %1420 = vadd.xlane.f32.xlu1 %v1419_v29  ;;  %v4300_v25 = vadd.f32 %v4219_v31, %v1217_v6  ;;  %v1353_v42 = vadd.f32 %v4288_v8, %v4293_v52  ;;  %v1331_v26 = vpop.f32.mrf.mxu1 }
 0x17a   :  { %v1220_v32 = vpop.f32.mrf.mxu0  ;;  %v1397_v47 = vmul.f32 %v4288_v8, %v4288_v8  ;;  %v1146_v6 = vadd.f32 %v4856_v18, %v4185_v17  ;;  %v4861_v17 = vld [vmem:[#allocation15_spill] sm:$0xff] }
 0x17b   :  { %4850 = vst [vmem:[#allocation28_spill] sm:$0xff] %v4300_v25  ;;  %v4303_v62 = vadd.f32 %v4227_v34, %v1219_v56  ;;  %1423 = vadd.xlane.f32.xlu0 %v1422_v38  ;;  %v1221_v14 = vadd.f32 %v1220_v32, %v1128_v63  ;;  %v1398_v44 = vmul.f32 %v4300_v25, %v4300_v25  ;;  %v1333_v38 = vpop.f32.mrf.mxu1 }
 0x17c   :  { %v1222_v11 = vpop.f32.mrf.mxu0  ;;  %v1425_v27 = vadd.f32 %v1397_v47, %v1396_v12  ;;  %v4860_v47 = vld [vmem:[#allocation12_spill] sm:$0xff] }
 0x17d   :  { %4851 = vst [vmem:[#allocation29_spill] sm:$0xff] %v4303_v62  ;;  %v1223_v31 = vadd.f32 %v1222_v11, %v1130_v60  ;;  %1354 = vadd.xlane.f32.xlu1 %v1353_v42  ;;  %v1356_v34 = vadd.f32 %v4303_v62, %v4300_v25  ;;  %v1399_v36 = vmul.f32 %v4303_v62, %v4303_v62  ;;  %v4859_v42 = vld [vmem:[#allocation14_spill] sm:$0xff]  ;;  %v4862_v11 = vld [vmem:[#allocation13_spill] sm:$0xff] }
 0x17e   :  { %v1226_v0 = vpop.f32.mrf.mxu0  ;;  %v4325_v13 = vadd.f32 %v4235_v21, %v1221_v14 }
 0x17f   :  { %v4320_v7 = vadd.f32 %v4245_v37, %v1223_v31  ;;  %v1227_v16 = vadd.f32 %v1226_v0, %v1134_v9  ;;  %1357 = vadd.xlane.f32.xlu0 %v1356_v34  ;;  %v1428_v49 = vadd.f32 %v1399_v36, %v1398_v44  ;;  %v1148_v9 = vadd.f32 %v4860_v47, %v4859_v42  ;;  %v1335_v36 = vpop.f32.mrf.mxu1 }
 0x180   :  { %v1228_v41 = vpop.f32.mrf.mxu0  ;;  %4853 = vst [vmem:[#allocation31_spill] sm:$0xff] %v4325_v13 }
 0x181   :  { %4852 = vst [vmem:[#allocation30_spill] sm:$0xff] %v4320_v7  ;;  %v1229_v4 = vadd.f32 %v1228_v41, %v1136_v35  ;;  %1426 = vadd.xlane.f32.xlu1 %v1425_v27  ;;  %v4332_v45 = vadd.f32 %v4259_v33, %v1227_v16  ;;  %v1359_v21 = vadd.f32 %v4320_v7, %v4325_v13 }
 0x182   :  { %v1230_v37 = vpop.f32.mrf.mxu0  ;;  %v1401_v53 = vmul.f32 %v4320_v7, %v4320_v7  ;;  %v1400_v33 = vmul.f32 %v4325_v13, %v4325_v13 }
 0x183   :  { %4854 = vst [vmem:[#allocation32_spill] sm:$0xff] %v4332_v45  ;;  %v4334_v1 = vadd.f32 %v1321_v57, %v1229_v4  ;;  %1429 = vadd.xlane.f32.xlu0 %v1428_v49  ;;  %v1231_v20 = vadd.f32 %v1230_v37, %v1138_v15  ;;  %v1402_v55 = vmul.f32 %v4332_v45, %v4332_v45 }
 0x184   :  { %v1232_v2 = vpop.f32.mrf.mxu0  ;;  %v1431_v30 = vadd.f32 %v1401_v53, %v1400_v33 }
 0x185   :  { %4855 = vst [vmem:[#allocation33_spill] sm:$0xff] %v4334_v1  ;;  %v1233_v19 = vadd.f32 %v1232_v2, %v1140_v24  ;;  %1360 = vadd.xlane.f32.xlu1 %v1359_v21  ;;  %v1362_v28 = vadd.f32 %v4334_v1, %v4332_v45  ;;  %v1403_v57 = vmul.f32 %v4334_v1, %v4334_v1 }
 0x186   :  { %v1236_v29 = vpop.f32.mrf.mxu0  ;;  %v4354_v56 = vadd.f32 %v1323_v23, %v1231_v20 }
 0x187   :  { %v4350_v46 = vadd.f32 %v1325_v59, %v1233_v19  ;;  %v1237_v22 = vadd.f32 %v1236_v29, %v1144_v43  ;;  %1363 = vadd.xlane.f32.xlu0 %v1362_v28  ;;  %v1434_v32 = vadd.f32 %v1403_v57, %v1402_v55  ;;  %v1150_v59 = vadd.f32 %v4862_v11, %v4861_v17 }
 0x188   :  { %4858 = vst [vmem:[#allocation34_spill] sm:$0xff] %v4354_v56  ;;  %v1238_v63 = vpop.f32.mrf.mxu0  ;;  %v1404_v0 = vmul.f32 %v4354_v56, %v4354_v56 }
 0x189   :  { %4857 = vst [vmem:[#allocation11_spill] sm:$0xff] %v4350_v46  ;;  %v1239_v60 = vadd.f32 %v1238_v63, %v1146_v6  ;;  %1432 = vadd.xlane.f32.xlu1 %v1431_v30  ;;  %v4360_v14 = vadd.f32 %v1329_v3, %v1237_v22  ;;  %v1365_v23 = vadd.f32 %v4350_v46, %v4354_v56 }
 0x18a   :  { %v1240_v12 = vpop.f32.mrf.mxu0  ;;  %v1405_v34 = vmul.f32 %v4350_v46, %v4350_v46 }
 0x18b   :  { %4863 = vst [vmem:[#allocation14_spill] sm:$0xff] %v4360_v14  ;;  %v4362_v31 = vadd.f32 %v1331_v26, %v1239_v60  ;;  %1435 = vadd.xlane.f32.xlu0 %v1434_v32  ;;  %v1241_v16 = vadd.f32 %v1240_v12, %v1148_v9  ;;  %v1406_v15 = vmul.f32 %v4360_v14, %v4360_v14 }
 0x18c   :  { %v1242_v35 = vpop.f32.mrf.mxu0  ;;  %v1437_v49 = vadd.f32 %v1405_v34, %v1404_v0 }
 0x18d   :  { %4864 = vst [vmem:[#allocation12_spill] sm:$0xff] %v4362_v31  ;;  %v1243_v27 = vadd.f32 %v1242_v35, %v1150_v59  ;;  %1366 = vadd.xlane.f32.xlu1 %v1365_v23  ;;  %v1368_v44 = vadd.f32 %v4362_v31, %v4360_v14  ;;  %v1407_v41 = vmul.f32 %v4362_v31, %v4362_v31 }
 0x18e   :  { %v4378_v37 = vadd.f32 %v1333_v38, %v1241_v16 }
 0x18f   :  { %v2357_v3 = vpop.f32.mrf.mxu1  ;;  %v4374_v4 = vadd.f32 %v1335_v36, %v1243_v27  ;;  %1369 = vadd.xlane.f32.xlu0 %v1368_v44  ;;  %v1440_v21 = vadd.f32 %v1407_v41, %v1406_v15 }
 0x190   :  { %4866 = vst [vmem:[#allocation13_spill] sm:$0xff] %v4378_v37  ;;  %v1408_v2 = vmul.f32 %v4378_v37, %v4378_v37 }
 0x191   :  { %4865 = vst [vmem:[#allocation15_spill] sm:$0xff] %v4374_v4  ;;  %v2359_v24 = vpop.f32.mrf.mxu1  ;;  %1438 = vadd.xlane.f32.xlu1 %v1437_v49  ;;  %v1371_v43 = vadd.f32 %v4374_v4, %v4378_v37  ;;  %v1409_v20 = vmul.f32 %v4374_v4, %v4374_v4 }
 0x193   :  { %v2361_v53 = vpop.f32.mrf.mxu1  ;;  %1441 = vadd.xlane.f32.xlu0 %v1440_v21  ;;  %v1443_v28 = vadd.f32 %v1409_v20, %v1408_v2 }
 0x195   :  { %v2363_v26 = vpop.f32.mrf.mxu1  ;;  %1372 = vadd.xlane.f32.xlu1 %v1371_v43 }
 0x197   :  { %v4386_v19 = vpop.f32.mrf.mxu1 }
 0x199   :  { %v4388_v33 = vpop.f32.mrf.mxu1  ;;  %1444 = vadd.xlane.f32.xlu1 %v1443_v28 }
 0x19b   :  { %v4390_v57 = vpop.f32.mrf.mxu1 }
 0x19d   :  { %v4392_v18 = vpop.f32.mrf.mxu1 }
 0x19e   :  { %v2450_v6 = vpop.f32.mrf.mxu0 }
 0x19f   :  { %v4394_v29 = vpop.f32.mrf.mxu1  ;;  %v2451_v7 = vadd.f32 %v2450_v6, %v2357_v3 }
 0x1a0   :  { %v2452_v22 = vpop.f32.mrf.mxu0 }
 0x1a1   :  { %v4396_v30 = vpop.f32.mrf.mxu1  ;;  %v2453_v25 = vadd.f32 %v2452_v22, %v2359_v24 }
 0x1a2   :  { %v2454_v55 = vpop.f32.mrf.mxu0 }
 0x1a3   :  { %v4398_v38 = vpop.f32.mrf.mxu1  ;;  %v2455_v51 = vadd.f32 %v2454_v55, %v2361_v53 }
 0x1a4   :  { %v2456_v63 = vpop.f32.mrf.mxu0 }
 0x1a5   :  { %v4400_v60 = vpop.f32.mrf.mxu1  ;;  %v2457_v61 = vadd.f32 %v2456_v63, %v2363_v26 }
 0x1a6   :  { %v2460_v32 = vpop.f32.mrf.mxu0 }
 0x1a7   :  { %v4402_v42 = vpop.f32.mrf.mxu1  ;;  %v2461_v3 = vadd.f32 %v2460_v32, %v4386_v19 }
 0x1a8   :  { %v2462_v47 = vpop.f32.mrf.mxu0 }
 0x1a9   :  { %v4404_v9 = vpop.f32.mrf.mxu1 }
 0x1aa   :  { %v2464_v17 = vpop.f32.mrf.mxu0 }
 0x1ab   :  { %v4406_v11 = vpop.f32.mrf.mxu1 }
 0x1ac   :  { %v2466_v59 = vpop.f32.mrf.mxu0 }
 0x1ad   :  { %v4408_v12 = vpop.f32.mrf.mxu1 }
 0x1ae   :  { %v4410_v23 = vpop.f32.mrf.mxu0 }
 0x1af   :  { %v4414_v36 = vpop.f32.mrf.mxu1  ;;  %v2471_v63 = vadd.f32 %v4410_v23, %v4394_v29 }
 0x1b0   :  { %v4412_v34 = vpop.f32.mrf.mxu0 }
 0x1b1   :  { %v4420_v16 = vpop.f32.mrf.mxu1 }
 0x1b2   :  { %v4416_v35 = vpop.f32.mrf.mxu0 }
 0x1b3   :  { %v4426_v41 = vpop.f32.mrf.mxu1 }
 0x1b4   :  { %v4418_v0 = vpop.f32.mrf.mxu0 }
 0x1b5   :  { %v4432_v21 = vpop.f32.mrf.mxu1 }
 0x1b6   :  { %v4422_v27 = vpop.f32.mrf.mxu0 }
 0x1b7   :  { %v4436_v20 = vpop.f32.mrf.mxu1 }
 0x1b8   :  { %v4424_v44 = vpop.f32.mrf.mxu0 }
 0x1b9   :  { %v4442_v4 = vpop.f32.mrf.mxu1 }
 0x1ba   :  { %v4428_v49 = vpop.f32.mrf.mxu0 }
 0x1bb   :  { %v4448_v14 = vpop.f32.mrf.mxu1 }
 0x1bc   :  { %v4430_v15 = vpop.f32.mrf.mxu0 }
 0x1bd   :  { %v4454_v1 = vpop.f32.mrf.mxu1 }
 0x1be   :  { %v4434_v43 = vpop.f32.mrf.mxu0  ;;  %4867 = vst [vmem:[#allocation35_spill] sm:$0xff] %v4454_v1 }
 0x1c0   :  { %v4438_v2 = vpop.f32.mrf.mxu0 }
 0x1c2   :  { %v4440_v28 = vpop.f32.mrf.mxu0 }
 0x1c4   :  { %v4444_v37 = vpop.f32.mrf.mxu0 }
 0x1c6   :  { %v4446_v31 = vpop.f32.mrf.mxu0 }
 0x1c8   :  { %v4450_v46 = vpop.f32.mrf.mxu0 }
 0x1ca   :  { %v4452_v56 = vpop.f32.mrf.mxu0 }
 0x1cc   :  { %v4456_v45 = vpop.f32.mrf.mxu0 }
 0x1ce   :  { %v2636_v62 = vpop.f32.mrf.mxu0 }
 0x1cf   :  { %v2543_v13 = vpop.f32.mrf.mxu1 }
 0x1d0   :  { %v2544_v8 = vadd.f32 %v2543_v13, %v2451_v7  ;;  %v2638_v39 = vpop.f32.mrf.mxu0 }
 0x1d1   :  { %v2545_v52 = vpop.f32.mrf.mxu1 }
 0x1d2   :  { %v2546_v40 = vadd.f32 %v2545_v52, %v2453_v25  ;;  %v2640_v58 = vpop.f32.mrf.mxu0  ;;  %v4458_v10 = vadd.f32 %v2636_v62, %v2544_v8  ;;  %v2463_v52 = vadd.f32 %v2462_v47, %v4388_v33 }
 0x1d3   :  { %v2547_v5 = vpop.f32.mrf.mxu1 }
 0x1d4   :  { %v4460_v48 = vadd.f32 %v2638_v39, %v2546_v40  ;;  %v2548_v54 = vadd.f32 %v2547_v5, %v2455_v51  ;;  %v2642_v1 = vpop.f32.mrf.mxu0  ;;  %v2743_v51 = vmul.f32 %v4458_v10, %v4458_v10 }
 0x1d5   :  { %v2549_v50 = vpop.f32.mrf.mxu1 }
 0x1d6   :  { %v2550_v6 = vadd.f32 %v2549_v50, %v2457_v61  ;;  %v2695_v7 = vadd.f32 %v4460_v48, %v4458_v10  ;;  %v2744_v13 = vmul.f32 %v4460_v48, %v4460_v48  ;;  %v2646_v24 = vpop.f32.mrf.mxu0  ;;  %v4468_v8 = vadd.f32 %v2640_v58, %v2548_v54 }
 0x1d7   :  { %v2553_v25 = vpop.f32.mrf.mxu1  ;;  %v2465_v50 = vadd.f32 %v2464_v17, %v4390_v57  ;;  %v2467_v58 = vadd.f32 %v2466_v59, %v4392_v18 }
 0x1d8   :  { %v4470_v40 = vadd.f32 %v2642_v1, %v2550_v6  ;;  %v2554_v5 = vadd.f32 %v2553_v25, %v2461_v3  ;;  %2696 = vadd.xlane.f32.xlu0 %v2695_v7  ;;  %v2648_v39 = vpop.f32.mrf.mxu0  ;;  %v2767_v53 = vadd.f32 %v2744_v13, %v2743_v51  ;;  %v2745_v57 = vmul.f32 %v4468_v8, %v4468_v8 }
 0x1d9   :  { %v2555_v61 = vpop.f32.mrf.mxu1  ;;  %v2473_v6 = vadd.f32 %v4412_v34, %v4396_v30 }
 0x1da   :  { %v2556_v62 = vadd.f32 %v2555_v61, %v2463_v52  ;;  %v2698_v26 = vadd.f32 %v4470_v40, %v4468_v8  ;;  %v2746_v54 = vmul.f32 %v4470_v40, %v4470_v40  ;;  %v4480_v1 = vadd.f32 %v2646_v24, %v2554_v5  ;;  %v2650_v33 = vpop.f32.mrf.mxu0 }
 0x1db   :  { %v2557_v19 = vpop.f32.mrf.mxu1  ;;  %v2475_v24 = vadd.f32 %v4416_v35, %v4398_v38 }
 0x1dc   :  { %v4482_v22 = vadd.f32 %v2648_v39, %v2556_v62  ;;  %v2558_v55 = vadd.f32 %v2557_v19, %v2465_v50  ;;  %2768 = vadd.xlane.f32.xlu0 %v2767_v53  ;;  %2699 = vadd.xlane.f32.xlu1 %v2698_v26  ;;  %v2652_v47 = vpop.f32.mrf.mxu0  ;;  %v2770_v59 = vadd.f32 %v2746_v54, %v2745_v57 }
 0x1dd   :  { %v2559_v32 = vpop.f32.mrf.mxu1  ;;  %v2747_v52 = vmul.f32 %v4480_v1, %v4480_v1  ;;  %v2477_v39 = vadd.f32 %v4418_v0, %v4400_v60 }
 0x1de   :  { %v2560_v17 = vadd.f32 %v2559_v32, %v2467_v58  ;;  %v2701_v18 = vadd.f32 %v4482_v22, %v4480_v1  ;;  %v2748_v3 = vmul.f32 %v4482_v22, %v4482_v22  ;;  %v2656_v13 = vpop.f32.mrf.mxu0  ;;  %v4496_v25 = vadd.f32 %v2650_v33, %v2558_v55 }
 0x1df   :  { %v2563_v7 = vpop.f32.mrf.mxu1  ;;  %v2481_v58 = vadd.f32 %v4422_v27, %v4402_v42 }
 0x1e0   :  { %v4498_v29 = vadd.f32 %v2652_v47, %v2560_v17  ;;  %v2564_v23 = vadd.f32 %v2563_v7, %v2471_v63  ;;  %2702 = vadd.xlane.f32.xlu0 %v2701_v18  ;;  %2771 = vadd.xlane.f32.xlu1 %v2770_v59  ;;  %v2658_v51 = vpop.f32.mrf.mxu0  ;;  %v2773_v61 = vadd.f32 %v2748_v3, %v2747_v52 }
 0x1e1   :  { %v2565_v5 = vpop.f32.mrf.mxu1  ;;  %v2749_v35 = vmul.f32 %v4496_v25, %v4496_v25  ;;  %v2483_v63 = vadd.f32 %v4424_v44, %v4404_v9  ;;  %v2485_v59 = vadd.f32 %v4428_v49, %v4406_v11  ;;  %v2487_v52 = vadd.f32 %v4430_v15, %v4408_v12 }
 0x1e2   :  { %v2566_v50 = vadd.f32 %v2565_v5, %v2473_v6  ;;  %v2704_v30 = vadd.f32 %v4498_v29, %v4496_v25  ;;  %v2750_v34 = vmul.f32 %v4498_v29, %v4498_v29  ;;  %v4508_v62 = vadd.f32 %v2656_v13, %v2564_v23  ;;  %v2660_v26 = vpop.f32.mrf.mxu0 }
 0x1e3   :  { %v2567_v53 = vpop.f32.mrf.mxu1 }
 0x1e4   :  { %v4510_v54 = vadd.f32 %v2658_v51, %v2566_v50  ;;  %v2568_v38 = vadd.f32 %v2567_v53, %v2475_v24  ;;  %2774 = vadd.xlane.f32.xlu0 %v2773_v61  ;;  %2705 = vadd.xlane.f32.xlu1 %v2704_v30  ;;  %v2662_v33 = vpop.f32.mrf.mxu0  ;;  %v2776_v0 = vadd.f32 %v2750_v34, %v2749_v35 }
 0x1e5   :  { %v2569_v19 = vpop.f32.mrf.mxu1  ;;  %v2751_v17 = vmul.f32 %v4508_v62, %v4508_v62  ;;  %v2491_v50 = vadd.f32 %v4434_v43, %v4414_v36  ;;  %v2493_v53 = vadd.f32 %v4438_v2, %v4420_v16 }
 0x1e6   :  { %v2570_v55 = vadd.f32 %v2569_v19, %v2477_v39  ;;  %v2707_v60 = vadd.f32 %v4510_v54, %v4508_v62  ;;  %v2752_v57 = vmul.f32 %v4510_v54, %v4510_v54  ;;  %v2666_v47 = vpop.f32.mrf.mxu0  ;;  %v4524_v18 = vadd.f32 %v2660_v26, %v2568_v38 }
 0x1e7   :  { %v2573_v32 = vpop.f32.mrf.mxu1  ;;  %v2495_v19 = vadd.f32 %v4440_v28, %v4426_v41 }
 0x1e8   :  { %v4526_v42 = vadd.f32 %v2662_v33, %v2570_v55  ;;  %v2574_v27 = vadd.f32 %v2573_v32, %v2481_v58  ;;  %2708 = vadd.xlane.f32.xlu0 %v2707_v60  ;;  %2777 = vadd.xlane.f32.xlu1 %v2776_v0  ;;  %v2668_v6 = vpop.f32.mrf.mxu0  ;;  %v2779_v13 = vadd.f32 %v2752_v57, %v2751_v17 }
 0x1e9   :  { %v2575_v3 = vpop.f32.mrf.mxu1  ;;  %v2753_v49 = vmul.f32 %v4524_v18, %v4524_v18 }
 0x1ea   :  { %v2576_v7 = vadd.f32 %v2575_v3, %v2483_v63  ;;  %v2710_v9 = vadd.f32 %v4526_v42, %v4524_v18  ;;  %v2754_v44 = vmul.f32 %v4526_v42, %v4526_v42  ;;  %v4536_v23 = vadd.f32 %v2666_v47, %v2574_v27  ;;  %v2670_v5 = vpop.f32.mrf.mxu0 }
 0x1eb   :  { %v2577_v24 = vpop.f32.mrf.mxu1  ;;  %v2497_v63 = vadd.f32 %v4444_v37, %v4432_v21  ;;  %v2501_v3 = vadd.f32 %v4446_v31, %v4436_v20 }
 0x1ec   :  { %v4538_v51 = vadd.f32 %v2668_v6, %v2576_v7  ;;  %v2578_v11 = vadd.f32 %v2577_v24, %v2485_v59  ;;  %2780 = vadd.xlane.f32.xlu0 %v2779_v13  ;;  %2711 = vadd.xlane.f32.xlu1 %v2710_v9  ;;  %v2672_v30 = vpop.f32.mrf.mxu0  ;;  %v2782_v15 = vadd.f32 %v2754_v44, %v2753_v49 }
 0x1ed   :  { %v2579_v61 = vpop.f32.mrf.mxu1  ;;  %v2755_v35 = vmul.f32 %v4536_v23, %v4536_v23 }
 0x1ee   :  { %v2580_v34 = vadd.f32 %v2579_v61, %v2487_v52  ;;  %v2713_v12 = vadd.f32 %v4538_v51, %v4536_v23  ;;  %v2756_v39 = vmul.f32 %v4538_v51, %v4538_v51  ;;  %v2676_v38 = vpop.f32.mrf.mxu0  ;;  %v4552_v58 = vadd.f32 %v2670_v5, %v2578_v11 }
 0x1ef   :  { %v2583_v26 = vpop.f32.mrf.mxu1  ;;  %v2503_v52 = vadd.f32 %v4450_v46, %v4442_v4  ;;  %v2505_v4 = vadd.f32 %v4452_v56, %v4448_v14 }
 0x1f0   :  { %v4554_v36 = vadd.f32 %v2672_v30, %v2580_v34  ;;  %v2584_v43 = vadd.f32 %v2583_v26, %v2491_v50  ;;  %2714 = vadd.xlane.f32.xlu0 %v2713_v12  ;;  %2783 = vadd.xlane.f32.xlu1 %v2782_v15  ;;  %v2678_v55 = vpop.f32.mrf.mxu0  ;;  %v1340_v0 = vpop.xlane.xlu0 %1339  ;;  %v2785_v16 = vadd.f32 %v2756_v39, %v2755_v35 }
 0x1f1   :  { %v2585_v33 = vpop.f32.mrf.mxu1  ;;  %v4566_v47 = vmul.f32 0.00390625, %v1340_v0  ;;  %v2757_v59 = vmul.f32 %v4552_v58, %v4552_v58 }
 0x1f2   :  { %v2586_v60 = vadd.f32 %v2585_v33, %v2493_v53  ;;  %v2716_v2 = vadd.f32 %v4554_v36, %v4552_v58  ;;  %v2758_v57 = vmul.f32 %v4554_v36, %v4554_v36  ;;  %v4564_v32 = vadd.f32 %v2676_v38, %v2584_v43  ;;  %v2680_v41 = vpop.f32.mrf.mxu0  ;;  %v4868_v38 = vld [vmem:[#allocation35_spill] sm:$0xff] }
 0x1f3   :  { %v2587_v17 = vpop.f32.mrf.mxu1  ;;  %v1458_v24 = vmul.f32 %v4566_v47, %v4566_v47  ;;  %v2507_v35 = vadd.f32 %v4456_v45, %v4868_v38 }
 0x1f4   :  { %v4568_v28 = vadd.f32 %v2678_v55, %v2586_v60  ;;  %v2588_v27 = vadd.f32 %v2587_v17, %v2495_v19  ;;  %2786 = vadd.xlane.f32.xlu0 %v2785_v16  ;;  %2717 = vadd.xlane.f32.xlu1 %v2716_v2  ;;  %v2682_v7 = vpop.f32.mrf.mxu0  ;;  %v1412_v21 = vpop.xlane.xlu0 %1411  ;;  %v2788_v9 = vadd.f32 %v2758_v57, %v2757_v59 }
 0x1f5   :  { %v2589_v6 = vpop.f32.mrf.mxu1  ;;  %v1446_v5 = vmul.f32 0.00390625, %v1412_v21  ;;  %v2759_v20 = vmul.f32 %v4564_v32, %v4564_v32 }
 0x1f6   :  { %v2590_v37 = vadd.f32 %v2589_v6, %v2497_v63  ;;  %v2719_v13 = vadd.f32 %v4568_v28, %v4564_v32  ;;  %v2760_v44 = vmul.f32 %v4568_v28, %v4568_v28  ;;  %v2686_v31 = vpop.f32.mrf.mxu0  ;;  %v4584_v49 = vadd.f32 %v2680_v41, %v2588_v27  ;;  %v1415_v30 = vpop.xlane.xlu1 %1414 }
 0x1f7   :  { %v2593_v11 = vpop.f32.mrf.mxu1  ;;  %v1470_v34 = vsub.f32 %v1446_v5, %v1458_v24  ;;  %v1447_v57 = vmul.f32 0.00390625, %v1415_v30 }
 0x1f8   :  { %v4586_v50 = vadd.f32 %v2682_v7, %v2590_v37  ;;  %v2594_v61 = vadd.f32 %v2593_v11, %v2501_v3  ;;  %2720 = vadd.xlane.f32.xlu0 %v2719_v13  ;;  %2789 = vadd.xlane.f32.xlu1 %v2788_v9  ;;  %v2688_v46 = vpop.f32.mrf.mxu0  ;;  %v1343_v39 = vpop.xlane.xlu0 %1342  ;;  %v2791_v53 = vadd.f32 %v2760_v44, %v2759_v20 }
 0x1f9   :  { %v2595_v12 = vpop.f32.mrf.mxu1  ;;  %v1482_v43 = vmax.f32 %v1470_v34, 0.0  ;;  %v4594_v19 = vmul.f32 0.00390625, %v1343_v39  ;;  %v2761_v41 = vmul.f32 %v4584_v49, %v4584_v49 }
 0x1fa   :  { %v2596_v15 = vadd.f32 %v2595_v12, %v2503_v52  ;;  %v2722_v26 = vadd.f32 %v4586_v50, %v4584_v49  ;;  %v2690_v55 = vpop.f32.mrf.mxu0  ;;  %v2762_v60 = vmul.f32 %v4586_v50, %v4586_v50  ;;  %v4598_v0 = vadd.f32 %v2686_v31, %v2594_v61  ;;  %v1346_v16 = vpop.xlane.xlu1 %1345 }
 0x1fb   :  { %v2597_v33 = vpop.f32.mrf.mxu1  ;;  %v1518_v2 = vadd.f32 1e-05, %v1482_v43  ;;  %v1459_v45 = vmul.f32 %v4594_v19, %v4594_v19  ;;  %v4606_v27 = vmul.f32 0.00390625, %v1346_v16 }
 0x1fc   :  { %v4600_v56 = vadd.f32 %v2688_v46, %v2596_v15  ;;  %v2598_v14 = vadd.f32 %v2597_v33, %v2505_v4  ;;  %2792 = vadd.xlane.f32.xlu0 %v2791_v53  ;;  %2723 = vadd.xlane.f32.xlu1 %v2722_v26  ;;  %v2692_v17 = vpop.f32.mrf.mxu0  ;;  %v1418_v3 = vpop.xlane.xlu0 %1417  ;;  %v2794_v21 = vadd.f32 %v2762_v60, %v2761_v41 }
 0x1fd   :  { %v2599_v63 = vpop.f32.mrf.mxu1  ;;  %3760 = vrsqrt.f32 %v1518_v2  ;;  %v1471_v7 = vsub.f32 %v1447_v57, %v1459_v45  ;;  %v1448_v37 = vmul.f32 0.00390625, %v1418_v3  ;;  %v1460_v44 = vmul.f32 %v4606_v27, %v4606_v27 }
 0x1fe   :  { %v2600_v59 = vadd.f32 %v2599_v63, %v2507_v35  ;;  %v2725_v6 = vadd.f32 %v4600_v56, %v4598_v0  ;;  %v4610_v13 = vadd.f32 %v2690_v55, %v2598_v14  ;;  %v1349_v52 = vpop.xlane.xlu1 %1348  ;;  %v2764_v11 = vmul.f32 %v4600_v56, %v4600_v56 }
 0x1ff   :  { %v1483_v24 = vmax.f32 %v1471_v7, 0.0  ;;  %v4616_v5 = vmul.f32 0.00390625, %v1349_v52  ;;  %v1472_v31 = vsub.f32 %v1448_v37, %v1460_v44  ;;  %v2763_v61 = vmul.f32 %v4598_v0, %v4598_v0 }
 0x200   :  { %v4612_v9 = vadd.f32 %v2692_v17, %v2600_v59  ;;  %2726 = vadd.xlane.f32.xlu0 %v2725_v6  ;;  %2795 = vadd.xlane.f32.xlu1 %v2794_v21  ;;  %v1352_v20 = vpop.xlane.xlu0 %1351  ;;  %v2765_v38 = vmul.f32 %v4610_v13, %v4610_v13  ;;  %v4869_v17 = vld [vmem:[#allocation16_spill] sm:$0xff]  ;;  %v4870_v59 = vld [vmem:[#allocation17_spill] sm:$0xff] }
 0x201   :  { %v1519_v34 = vadd.f32 1e-05, %v1483_v24  ;;  %v4624_v12 = vmul.f32 0.00390625, %v1352_v20  ;;  %v1484_v4 = vmax.f32 %v1472_v31, 0.0  ;;  %v2797_v39 = vadd.f32 %v2764_v11, %v2763_v61 }
 0x202   :  { %v2728_v30 = vadd.f32 %v4612_v9, %v4610_v13  ;;  %v2766_v46 = vmul.f32 %v4612_v9, %v4612_v9  ;;  %v1421_v15 = vpop.xlane.xlu1 %1420  ;;  %v1461_v53 = vmul.f32 %v4616_v5, %v4616_v5  ;;  %v1494_v41 = vsub.f32 %v4869_v17, %v4566_v47 }
 0x203   :  { %3762 = vrsqrt.f32 %v1519_v34  ;;  %v1449_v26 = vmul.f32 0.00390625, %v1421_v15  ;;  %v1520_v35 = vadd.f32 1e-05, %v1484_v4  ;;  %v1462_v55 = vmul.f32 %v4624_v12, %v4624_v12  ;;  %v4871_v4 = vld [vmem:[#allocation18_spill] sm:$0xff] }
 0x204   :  { %2729 = vadd.xlane.f32.xlu1 %v2728_v30  ;;  %2798 = vadd.xlane.f32.xlu0 %v2797_v39  ;;  %v1424_v43 = vpop.xlane.xlu0 %1423  ;;  %v2800_v14 = vadd.f32 %v2766_v46, %v2765_v38  ;;  %v1495_v3 = vsub.f32 %v4870_v59, %v4566_v47  ;;  %v1496_v15 = vsub.f32 %v4871_v4, %v4594_v19  ;;  %v4872_v38 = vld [vmem:[#allocation19_spill] sm:$0xff] }
 0x205   :  { %v1473_v33 = vsub.f32 %v1449_v26, %v1461_v53  ;;  %v1450_v60 = vmul.f32 0.00390625, %v1424_v43  ;;  %3764 = vrsqrt.f32 %v1520_v35  ;;  %v1497_v35 = vsub.f32 %v4872_v38, %v4594_v19 }
 0x206   :  { %v1355_v16 = vpop.xlane.xlu1 %1354 }
 0x207   :  { %v1485_v2 = vmax.f32 %v1473_v33, 0.0  ;;  %v1474_v57 = vsub.f32 %v1450_v60, %v1462_v55  ;;  %v4634_v45 = vmul.f32 0.00390625, %v1355_v16 }
 0x208   :  { %2801 = vadd.xlane.f32.xlu1 %v2800_v14  ;;  %v1358_v63 = vpop.xlane.xlu0 %1357 }
 0x209   :  { %v1521_v6 = vadd.f32 1e-05, %v1485_v2  ;;  %v1486_v7 = vmax.f32 %v1474_v57, 0.0  ;;  %v4640_v21 = vmul.f32 0.00390625, %v1358_v63  ;;  %v1463_v31 = vmul.f32 %v4634_v45, %v4634_v45  ;;  %v4873_v57 = vld [vmem:[#allocation20_spill] sm:$0xff] }
 0x20a   :  { %v3761_v37 = vpop.eup %3760  ;;  %v1427_v44 = vpop.xlane.xlu1 %1426  ;;  %v1498_v63 = vsub.f32 %v4873_v57, %v4606_v27 }
 0x20b   :  { %v1542_v52 = vmul.f32 %v3761_v37, %v1494_v41  ;;  %v1543_v24 = vmul.f32 %v3761_v37, %v1495_v3  ;;  %3766 = vrsqrt.f32 %v1521_v6  ;;  %v1522_v11 = vadd.f32 1e-05, %v1486_v7  ;;  %v4874_v41 = vld [vmem:[#allocation21_spill] sm:$0xff] }
 0x20c   :  { %v1451_v20 = vmul.f32 0.00390625, %v1427_v44  ;;  %v1464_v61 = vmul.f32 %v4640_v21, %v4640_v21  ;;  %v1430_v30 = vpop.xlane.xlu0 %1429  ;;  %v1499_v59 = vsub.f32 %v4874_v41, %v4606_v27 }
 0x20d   :  { %v1566_v34 = vmax.f32 %v1542_v52, 0.0  ;;  %v1567_v47 = vmax.f32 %v1543_v24, 0.0  ;;  %3768 = vrsqrt.f32 %v1522_v11  ;;  %v1452_v46 = vmul.f32 0.00390625, %v1430_v30 }
 0x20e   :  { %v1475_v39 = vsub.f32 %v1451_v20, %v1463_v31  ;;  %v1361_v53 = vpop.xlane.xlu1 %1360 }
 0x20f   :  { %v3344_v26 = vpack.c.bf16 %v1567_v47, %v1566_v34  ;;  %v1476_v43 = vsub.f32 %v1452_v46, %v1464_v61  ;;  %v4650_v33 = vmul.f32 0.00390625, %v1361_v53 }
 0x210   :  { %v3763_v55 = vpop.eup %3762  ;;  %v1487_v60 = vmax.f32 %v1475_v39, 0.0  ;;  %v1364_v14 = vpop.xlane.xlu0 %1363  ;;  %v4875_v39 = vld [vmem:[#allocation23_spill] sm:$0xff] }
 0x211   :  { %1662 = vst [vmem:[#allocation7] sm:$0xff] %v3344_v26  ;;  %v1544_v16 = vmul.f32 %v3763_v55, %v1496_v15  ;;  %v1545_v2 = vmul.f32 %v3763_v55, %v1497_v35  ;;  %v1488_v17 = vmax.f32 %v1476_v43, 0.0  ;;  %v4656_v6 = vmul.f32 0.00390625, %v1364_v14  ;;  %v4876_v26 = vld [vmem:[#allocation22_spill] sm:$0xff] }
 0x212   :  { %v1523_v3 = vadd.f32 1e-05, %v1487_v60  ;;  %v1465_v19 = vmul.f32 %v4650_v33, %v4650_v33  ;;  %v1433_v7 = vpop.xlane.xlu1 %1432  ;;  %v3765_v37 = vpop.eup %3764  ;;  %v1500_v53 = vsub.f32 %v4875_v39, %v4616_v5  ;;  %v1501_v38 = vsub.f32 %v4876_v26, %v4616_v5  ;;  %v4877_v60 = vld [vmem:[#allocation24_spill] sm:$0xff]  ;;  %v4879_v26 = vld [vmem:[#allocation27_spill] sm:$0xff] }
 0x213   :  { %v1568_v44 = vmax.f32 %v1544_v16, 0.0  ;;  %v1569_v52 = vmax.f32 %v1545_v2, 0.0  ;;  %v1524_v24 = vadd.f32 1e-05, %v1488_v17  ;;  %v1453_v11 = vmul.f32 0.00390625, %v1433_v7 }
 0x214   :  { %v1546_v31 = vmul.f32 %v3765_v37, %v1498_v63  ;;  %v1547_v20 = vmul.f32 %v3765_v37, %v1499_v59  ;;  %3770 = vrsqrt.f32 %v1523_v3  ;;  %v1436_v61 = vpop.xlane.xlu0 %1435  ;;  %v1466_v46 = vmul.f32 %v4656_v6, %v4656_v6  ;;  %v4878_v63 = vld [vmem:[#allocation25_spill] sm:$0xff] }
 0x215   :  { %v3345_v30 = vpack.c.bf16 %v1569_v52, %v1568_v44  ;;  %3772 = vrsqrt.f32 %v1524_v24  ;;  %v1477_v34 = vsub.f32 %v1453_v11, %v1465_v19  ;;  %v1454_v4 = vmul.f32 0.00390625, %v1436_v61 }
 0x216   :  { %v1570_v27 = vmax.f32 %v1546_v31, 0.0  ;;  %v1571_v47 = vmax.f32 %v1547_v20, 0.0  ;;  %v1367_v15 = vpop.xlane.xlu1 %1366  ;;  %v1502_v14 = vsub.f32 %v4877_v60, %v4624_v12  ;;  %v1503_v17 = vsub.f32 %v4878_v63, %v4624_v12 }
 0x217   :  { %1663 = vst [vmem:[#allocation7 + $0x8] sm:$0xff] %v3345_v30  ;;  %v1489_v35 = vmax.f32 %v1477_v34, 0.0  ;;  %v1478_v16 = vsub.f32 %v1454_v4, %v1466_v46  ;;  %v4668_v2 = vmul.f32 0.00390625, %v1367_v15 }
 0x218   :  { %v3767_v43 = vpop.eup %3766  ;;  %v3346_v55 = vpack.c.bf16 %v1571_v47, %v1570_v27  ;;  %v1370_v57 = vpop.xlane.xlu0 %1369 }
 0x219   :  { %v1548_v41 = vmul.f32 %v3767_v43, %v1500_v53  ;;  %v1549_v59 = vmul.f32 %v3767_v43, %v1501_v38  ;;  %v1525_v3 = vadd.f32 1e-05, %v1489_v35  ;;  %v1490_v7 = vmax.f32 %v1478_v16, 0.0  ;;  %v4880_v35 = vld [vmem:[#allocation26_spill] sm:$0xff] }
 0x21a   :  { %v3769_v19 = vpop.eup %3768  ;;  %1664 = vst [vmem:[#allocation7 + $0x10] sm:$0xff] %v3346_v55  ;;  %v4672_v5 = vmul.f32 0.00390625, %v1370_v57  ;;  %v1439_v37 = vpop.xlane.xlu1 %1438  ;;  %v1467_v20 = vmul.f32 %v4668_v2, %v4668_v2  ;;  %v1504_v38 = vsub.f32 %v4879_v26, %v4634_v45  ;;  %v1505_v43 = vsub.f32 %v4880_v35, %v4634_v45  ;;  %v4882_v57 = vld [vmem:[#allocation29_spill] sm:$0xff] }
 0x21b   :  { %v1572_v44 = vmax.f32 %v1548_v41, 0.0  ;;  %v1573_v52 = vmax.f32 %v1549_v59, 0.0  ;;  %v1550_v24 = vmul.f32 %v3769_v19, %v1502_v14  ;;  %v1551_v11 = vmul.f32 %v3769_v19, %v1503_v17  ;;  %v4881_v14 = vld [vmem:[#allocation28_spill] sm:$0xff] }
 0x21c   :  { %3774 = vrsqrt.f32 %v1525_v3  ;;  %v1526_v31 = vadd.f32 1e-05, %v1490_v7  ;;  %v1442_v61 = vpop.xlane.xlu0 %1441  ;;  %v1455_v27 = vmul.f32 0.00390625, %v1439_v37  ;;  %v1468_v47 = vmul.f32 %v4672_v5, %v4672_v5 }
 0x21d   :  { %v3347_v12 = vpack.c.bf16 %v1573_v52, %v1572_v44  ;;  %v1574_v30 = vmax.f32 %v1550_v24, 0.0  ;;  %v1575_v34 = vmax.f32 %v1551_v11, 0.0  ;;  %v1456_v46 = vmul.f32 0.00390625, %v1442_v61 }
 0x21e   :  { %3776 = vrsqrt.f32 %v1526_v31  ;;  %v1373_v4 = vpop.xlane.xlu1 %1372  ;;  %v1479_v39 = vsub.f32 %v1455_v27, %v1467_v20  ;;  %v1506_v16 = vsub.f32 %v4881_v14, %v4640_v21  ;;  %v1507_v63 = vsub.f32 %v4882_v57, %v4640_v21 }
 0x21f   :  { %1665 = vst [vmem:[#allocation7 + $0x18] sm:$0xff] %v3347_v12  ;;  %v3348_v15 = vpack.c.bf16 %v1575_v34, %v1574_v30  ;;  %v4678_v53 = vmul.f32 0.00390625, %v1373_v4  ;;  %v1480_v55 = vsub.f32 %v1456_v46, %v1468_v47  ;;  %v4883_v47 = vld [vmem:[#allocation31_spill] sm:$0xff]  ;;  %v4884_v4 = vld [vmem:[#allocation30_spill] sm:$0xff] }
 0x220   :  { %v1491_v17 = vmax.f32 %v1479_v39, 0.0  ;;  %v1508_v46 = vsub.f32 %v4883_v47, %v4650_v33 }
 0x221   :  { %v3771_v60 = vpop.eup %3770  ;;  %1666 = vst [vmem:[#allocation7 + $0x20] sm:$0xff] %v3348_v15  ;;  %v1492_v19 = vmax.f32 %v1480_v55, 0.0  ;;  %v1469_v7 = vmul.f32 %v4678_v53, %v4678_v53  ;;  %v1509_v15 = vsub.f32 %v4884_v4, %v4650_v33 }
 0x222   :  { %v3773_v41 = vpop.eup %3772  ;;  %v1552_v59 = vmul.f32 %v3771_v60, %v1504_v38  ;;  %v1553_v3 = vmul.f32 %v3771_v60, %v1505_v43  ;;  %v1445_v37 = vpop.xlane.xlu1 %1444  ;;  %v1527_v52 = vadd.f32 1e-05, %v1491_v17  ;;  %v4885_v38 = vld [vmem:[#allocation32_spill] sm:$0xff]  ;;  %v4886_v43 = vld [vmem:[#allocation33_spill] sm:$0xff] }
 0x223   :  { %v1554_v44 = vmul.f32 %v3773_v41, %v1506_v16  ;;  %v1555_v45 = vmul.f32 %v3773_v41, %v1507_v63  ;;  %v1457_v24 = vmul.f32 0.00390625, %v1445_v37  ;;  %v1528_v20 = vadd.f32 1e-05, %v1492_v19 }
 0x224   :  { %v1576_v11 = vmax.f32 %v1552_v59, 0.0  ;;  %v1577_v31 = vmax.f32 %v1553_v3, 0.0  ;;  %3778 = vrsqrt.f32 %v1527_v52  ;;  %v1510_v35 = vsub.f32 %v4885_v38, %v4656_v6  ;;  %v4889_v52 = vld [vmem:[#allocation14_spill] sm:$0xff] }
 0x225   :  { %v1578_v61 = vmax.f32 %v1554_v44, 0.0  ;;  %v1579_v12 = vmax.f32 %v1555_v45, 0.0  ;;  %v1481_v21 = vsub.f32 %v1457_v24, %v1469_v7  ;;  %3780 = vrsqrt.f32 %v1528_v20  ;;  %v4887_v7 = vld [vmem:[#allocation34_spill] sm:$0xff]  ;;  %v4888_v44 = vld [vmem:[#allocation11_spill] sm:$0xff] }
 0x226   :  { %v3349_v30 = vpack.c.bf16 %v1577_v31, %v1576_v11  ;;  %v1511_v55 = vsub.f32 %v4886_v43, %v4656_v6  ;;  %v1512_v37 = vsub.f32 %v4887_v7, %v4668_v2  ;;  %v1513_v45 = vsub.f32 %v4888_v44, %v4668_v2  ;;  %v4890_v11 = vld [vmem:[#allocation12_spill] sm:$0xff]  ;;  %v4891_v2 = vld [vmem:[#allocation13_spill] sm:$0xff] }
 0x227   :  { %v3350_v34 = vpack.c.bf16 %v1579_v12, %v1578_v61  ;;  %v1493_v27 = vmax.f32 %v1481_v21, 0.0  ;;  %v1514_v24 = vsub.f32 %v4889_v52, %v4672_v5  ;;  %v1515_v31 = vsub.f32 %v4890_v11, %v4672_v5 }
 0x228   :  { %1667 = vst [vmem:[#allocation7 + $0x28] sm:$0xff] %v3349_v30 }
 0x229   :  { %v3775_v39 = vpop.eup %3774  ;;  %1668 = vst [vmem:[#allocation7 + $0x30] sm:$0xff] %v3350_v34  ;;  %v1529_v26 = vadd.f32 1e-05, %v1493_v27 }
 0x22a   :  { %v1556_v60 = vmul.f32 %v3775_v39, %v1508_v46  ;;  %v1557_v14 = vmul.f32 %v3775_v39, %v1509_v15  ;;  %v1516_v15 = vsub.f32 %v4891_v2, %v4678_v53  ;;  %v4892_v39 = vld [vmem:[#allocation15_spill] sm:$0xff] }
 0x22b   :  { %v3777_v16 = vpop.eup %3776  ;;  %3782 = vrsqrt.f32 %v1529_v26  ;;  %v1517_v26 = vsub.f32 %v4892_v39, %v4678_v53 }
 0x22c   :  { %v1580_v57 = vmax.f32 %v1556_v60, 0.0  ;;  %v1581_v63 = vmax.f32 %v1557_v14, 0.0  ;;  %v1558_v17 = vmul.f32 %v3777_v16, %v1510_v35  ;;  %v1559_v41 = vmul.f32 %v3777_v16, %v1511_v55 }
 0x22e   :  { %v3351_v59 = vpack.c.bf16 %v1581_v63, %v1580_v57  ;;  %v1582_v3 = vmax.f32 %v1558_v17, 0.0  ;;  %v1583_v33 = vmax.f32 %v1559_v41, 0.0 }
 0x230   :  { %1669 = vst [vmem:[#allocation7 + $0x38] sm:$0xff] %v3351_v59  ;;  %v3352_v19 = vpack.c.bf16 %v1583_v33, %v1582_v3 }
 0x231   :  { %v3779_v6 = vpop.eup %3778 }
 0x232   :  { %1670 = vst [vmem:[#allocation7 + $0x40] sm:$0xff] %v3352_v19  ;;  %v3781_v20 = vpop.eup %3780  ;;  %v1560_v61 = vmul.f32 %v3779_v6, %v1512_v37  ;;  %v1561_v12 = vmul.f32 %v3779_v6, %v1513_v45 }
 0x233   :  { %v1562_v21 = vmul.f32 %v3781_v20, %v1514_v24  ;;  %v1563_v30 = vmul.f32 %v3781_v20, %v1515_v31 }
 0x234   :  { %v1584_v34 = vmax.f32 %v1560_v61, 0.0  ;;  %v1585_v27 = vmax.f32 %v1561_v12, 0.0 }
 0x235   :  { %v1586_v47 = vmax.f32 %v1562_v21, 0.0  ;;  %v1587_v46 = vmax.f32 %v1563_v30, 0.0 }
 0x236   :  { %v3353_v4 = vpack.c.bf16 %v1585_v27, %v1584_v34 }
 0x237   :  { %v3354_v35 = vpack.c.bf16 %v1587_v46, %v1586_v47 }
 0x238   :  { %v3783_v38 = vpop.eup %3782  ;;  %1671 = vst [vmem:[#allocation7 + $0x48] sm:$0xff] %v3353_v4 }
 0x239   :  { %v1564_v5 = vmul.f32 %v3783_v38, %v1516_v15  ;;  %v1565_v43 = vmul.f32 %v3783_v38, %v1517_v26  ;;  %1672 = vst [vmem:[#allocation7 + $0x50] sm:$0xff] %v3354_v35 }
 0x23b   :  { %v1588_v55 = vmax.f32 %v1564_v5, 0.0  ;;  %v1589_v60 = vmax.f32 %v1565_v43, 0.0 }
 0x23d   :  { %v3355_v14 = vpack.c.bf16 %v1589_v60, %v1588_v55 }
 0x23f   :  { %1673 = vst [vmem:[#allocation7 + $0x58] sm:$0xff] %v3355_v14 }
 0x261   :  { %v2697_v16 = vpop.xlane.xlu0 %2696 }
 0x262   :  { %v2731_v57 = vmul.f32 0.00390625, %v2697_v16 }
 0x264   :  { %v2815_v41 = vmul.f32 %v2731_v57, %v2731_v57  ;;  %v2851_v16 = vsub.f32 %v4458_v10, %v2731_v57 }
 0x265   :  { %v2769_v63 = vpop.xlane.xlu0 %2768  ;;  %v2700_v17 = vpop.xlane.xlu1 %2699 }
 0x266   :  { %v2803_v59 = vmul.f32 0.00390625, %v2769_v63  ;;  %v4710_v3 = vmul.f32 0.00390625, %v2700_v17  ;;  %v2852_v63 = vsub.f32 %v4460_v48, %v2731_v57 }
 0x268   :  { %v2827_v33 = vsub.f32 %v2803_v59, %v2815_v41  ;;  %v2816_v44 = vmul.f32 %v4710_v3, %v4710_v3  ;;  %v2854_v48 = vsub.f32 %v4470_v40, %v4710_v3 }
 0x269   :  { %v2703_v53 = vpop.xlane.xlu0 %2702  ;;  %v2772_v19 = vpop.xlane.xlu1 %2771 }
 0x26a   :  { %v2839_v7 = vmax.f32 %v2827_v33, 0.0  ;;  %v4712_v37 = vmul.f32 0.00390625, %v2703_v53  ;;  %v2804_v45 = vmul.f32 0.00390625, %v2772_v19 }
 0x26c   :  { %v2875_v6 = vadd.f32 1e-05, %v2839_v7  ;;  %v2828_v52 = vsub.f32 %v2804_v45, %v2816_v44  ;;  %v2817_v24 = vmul.f32 %v4712_v37, %v4712_v37  ;;  %v2855_v40 = vsub.f32 %v4480_v1, %v4712_v37 }
 0x26d   :  { %v2775_v11 = vpop.xlane.xlu0 %2774  ;;  %v2706_v31 = vpop.xlane.xlu1 %2705 }
 0x26e   :  { %3784 = vrsqrt.f32 %v2875_v6  ;;  %v2840_v20 = vmax.f32 %v2828_v52, 0.0  ;;  %v2805_v61 = vmul.f32 0.00390625, %v2775_v11  ;;  %v4718_v12 = vmul.f32 0.00390625, %v2706_v31 }
 0x26f   :  { %v2853_v52 = vsub.f32 %v4468_v8, %v4710_v3  ;;  %v2856_v3 = vsub.f32 %v4482_v22, %v4712_v37 }
 0x270   :  { %v2876_v21 = vadd.f32 1e-05, %v2840_v20  ;;  %v2829_v30 = vsub.f32 %v2805_v61, %v2817_v24  ;;  %v2818_v27 = vmul.f32 %v4718_v12, %v4718_v12  ;;  %v2857_v22 = vsub.f32 %v4496_v25, %v4718_v12 }
 0x271   :  { %v2709_v34 = vpop.xlane.xlu0 %2708  ;;  %v2778_v47 = vpop.xlane.xlu1 %2777  ;;  %v2858_v37 = vsub.f32 %v4498_v29, %v4718_v12 }
 0x272   :  { %3786 = vrsqrt.f32 %v2876_v21  ;;  %v2841_v46 = vmax.f32 %v2829_v30, 0.0  ;;  %v4722_v4 = vmul.f32 0.00390625, %v2709_v34  ;;  %v2806_v2 = vmul.f32 0.00390625, %v2778_v47 }
 0x274   :  { %v2877_v15 = vadd.f32 1e-05, %v2841_v46  ;;  %v2830_v39 = vsub.f32 %v2806_v2, %v2818_v27  ;;  %v2819_v5 = vmul.f32 %v4722_v4, %v4722_v4  ;;  %v2859_v29 = vsub.f32 %v4508_v62, %v4722_v4 }
 0x275   :  { %v2781_v26 = vpop.xlane.xlu0 %2780  ;;  %v2712_v38 = vpop.xlane.xlu1 %2711 }
 0x276   :  { %3788 = vrsqrt.f32 %v2877_v15  ;;  %v2842_v35 = vmax.f32 %v2830_v39, 0.0  ;;  %v2807_v43 = vmul.f32 0.00390625, %v2781_v26  ;;  %v4726_v55 = vmul.f32 0.00390625, %v2712_v38 }
 0x278   :  { %v2878_v60 = vadd.f32 1e-05, %v2842_v35  ;;  %v2831_v14 = vsub.f32 %v2807_v43, %v2819_v5  ;;  %v2820_v7 = vmul.f32 %v4726_v55, %v4726_v55 }
 0x279   :  { %v2715_v17 = vpop.xlane.xlu0 %2714  ;;  %v2784_v41 = vpop.xlane.xlu1 %2783 }
 0x27a   :  { %3790 = vrsqrt.f32 %v2878_v60  ;;  %v2843_v59 = vmax.f32 %v2831_v14, 0.0  ;;  %v4730_v33 = vmul.f32 0.00390625, %v2715_v17  ;;  %v2808_v53 = vmul.f32 0.00390625, %v2784_v41 }
 0x27b   :  { %v3785_v19 = vpop.eup %3784 }
 0x27c   :  { %v2899_v44 = vmul.f32 %v3785_v19, %v2851_v16  ;;  %v2900_v45 = vmul.f32 %v3785_v19, %v2852_v63  ;;  %v2879_v6 = vadd.f32 1e-05, %v2843_v59  ;;  %v2832_v10 = vsub.f32 %v2808_v53, %v2820_v7 }
 0x27d   :  { %v2821_v57 = vmul.f32 %v4730_v33, %v4730_v33  ;;  %v2787_v24 = vpop.xlane.xlu0 %2786  ;;  %v2718_v11 = vpop.xlane.xlu1 %2717 }
 0x27e   :  { %v2923_v31 = vmax.f32 %v2899_v44, 0.0  ;;  %v2924_v20 = vmax.f32 %v2900_v45, 0.0  ;;  %3792 = vrsqrt.f32 %v2879_v6  ;;  %v2809_v61 = vmul.f32 0.00390625, %v2787_v24 }
 0x27f   :  { %v3787_v21 = vpop.eup %3786  ;;  %v2844_v30 = vmax.f32 %v2832_v10, 0.0  ;;  %v4740_v34 = vmul.f32 0.00390625, %v2718_v11 }
 0x280   :  { %v3356_v27 = vpack.c.bf16 %v2924_v20, %v2923_v31  ;;  %v2901_v47 = vmul.f32 %v3787_v21, %v2853_v52  ;;  %v2902_v8 = vmul.f32 %v3787_v21, %v2854_v48  ;;  %v2833_v46 = vsub.f32 %v2809_v61, %v2821_v57 }
 0x281   :  { %v2880_v2 = vadd.f32 1e-05, %v2844_v30  ;;  %v2721_v15 = vpop.xlane.xlu0 %2720  ;;  %v2790_v39 = vpop.xlane.xlu1 %2789  ;;  %v2822_v60 = vmul.f32 %v4740_v34, %v4740_v34  ;;  %v2860_v31 = vsub.f32 %v4510_v54, %v4722_v4 }
 0x282   :  { %3020 = vst [vmem:[#allocation7 + $0x60] sm:$0xff] %v3356_v27  ;;  %v2925_v26 = vmax.f32 %v2901_v47, 0.0  ;;  %v2926_v38 = vmax.f32 %v2902_v8, 0.0  ;;  %v2845_v35 = vmax.f32 %v2833_v46, 0.0  ;;  %v4746_v5 = vmul.f32 0.00390625, %v2721_v15 }
 0x283   :  { %v3789_v43 = vpop.eup %3788  ;;  %3794 = vrsqrt.f32 %v2880_v2  ;;  %v2810_v14 = vmul.f32 0.00390625, %v2790_v39 }
 0x284   :  { %v3357_v16 = vpack.c.bf16 %v2926_v38, %v2925_v26  ;;  %v2903_v1 = vmul.f32 %v3789_v43, %v2855_v40  ;;  %v2904_v63 = vmul.f32 %v3789_v43, %v2856_v3  ;;  %v2881_v17 = vadd.f32 1e-05, %v2845_v35 }
 0x285   :  { %v2834_v41 = vsub.f32 %v2810_v14, %v2822_v60  ;;  %v2823_v59 = vmul.f32 %v4746_v5, %v4746_v5  ;;  %v2793_v53 = vpop.xlane.xlu0 %2792  ;;  %v2724_v19 = vpop.xlane.xlu1 %2723  ;;  %v2861_v26 = vsub.f32 %v4524_v18, %v4726_v55  ;;  %v2862_v38 = vsub.f32 %v4526_v42, %v4726_v55 }
 0x286   :  { %3021 = vst [vmem:[#allocation7 + $0x68] sm:$0xff] %v3357_v16  ;;  %v2927_v7 = vmax.f32 %v2903_v1, 0.0  ;;  %v2928_v44 = vmax.f32 %v2904_v63, 0.0  ;;  %3796 = vrsqrt.f32 %v2881_v17  ;;  %v2811_v45 = vmul.f32 0.00390625, %v2793_v53 }
 0x287   :  { %v3791_v6 = vpop.eup %3790  ;;  %v2846_v52 = vmax.f32 %v2834_v41, 0.0  ;;  %v4756_v48 = vmul.f32 0.00390625, %v2724_v19  ;;  %v2863_v18 = vsub.f32 %v4536_v23, %v4730_v33  ;;  %v2864_v42 = vsub.f32 %v4538_v51, %v4730_v33 }
 0x288   :  { %v3358_v10 = vpack.c.bf16 %v2928_v44, %v2927_v7  ;;  %v2905_v25 = vmul.f32 %v3791_v6, %v2857_v22  ;;  %v2906_v57 = vmul.f32 %v3791_v6, %v2858_v37  ;;  %v2835_v24 = vsub.f32 %v2811_v45, %v2823_v59 }
 0x289   :  { %v2882_v12 = vadd.f32 1e-05, %v2846_v52  ;;  %v2727_v11 = vpop.xlane.xlu0 %2726  ;;  %v2796_v30 = vpop.xlane.xlu1 %2795  ;;  %v2824_v8 = vmul.f32 %v4756_v48, %v4756_v48  ;;  %v2865_v51 = vsub.f32 %v4552_v58, %v4740_v34  ;;  %v2866_v33 = vsub.f32 %v4554_v36, %v4740_v34 }
 0x28a   :  { %3022 = vst [vmem:[#allocation7 + $0x70] sm:$0xff] %v3358_v10  ;;  %v2929_v20 = vmax.f32 %v2905_v25, 0.0  ;;  %v2930_v61 = vmax.f32 %v2906_v57, 0.0  ;;  %v2847_v21 = vmax.f32 %v2835_v24, 0.0  ;;  %v4762_v47 = vmul.f32 0.00390625, %v2727_v11 }
 0x28b   :  { %v3793_v27 = vpop.eup %3792  ;;  %3798 = vrsqrt.f32 %v2882_v12  ;;  %v2812_v46 = vmul.f32 0.00390625, %v2796_v30  ;;  %v2868_v30 = vsub.f32 %v4568_v28, %v4746_v5 }
 0x28c   :  { %v3359_v40 = vpack.c.bf16 %v2930_v61, %v2929_v20  ;;  %v2907_v62 = vmul.f32 %v3793_v27, %v2859_v29  ;;  %v2908_v3 = vmul.f32 %v3793_v27, %v2860_v31  ;;  %v2883_v2 = vadd.f32 1e-05, %v2847_v21 }
 0x28d   :  { %v2836_v15 = vsub.f32 %v2812_v46, %v2824_v8  ;;  %v2730_v4 = vpop.xlane.xlu1 %2729  ;;  %v2799_v43 = vpop.xlane.xlu0 %2798  ;;  %v2825_v1 = vmul.f32 %v4762_v47, %v4762_v47  ;;  %v2867_v21 = vsub.f32 %v4564_v32, %v4746_v5 }
 0x28e   :  { %3023 = vst [vmem:[#allocation7 + $0x78] sm:$0xff] %v3359_v40  ;;  %v2931_v39 = vmax.f32 %v2907_v62, 0.0  ;;  %v2932_v54 = vmax.f32 %v2908_v3, 0.0  ;;  %3800 = vrsqrt.f32 %v2883_v2  ;;  %v4770_v60 = vmul.f32 0.00390625, %v2730_v4 }
 0x28f   :  { %v2848_v35 = vmax.f32 %v2836_v15, 0.0  ;;  %v2813_v63 = vmul.f32 0.00390625, %v2799_v43  ;;  %v2869_v3 = vsub.f32 %v4584_v49, %v4756_v48  ;;  %v2870_v2 = vsub.f32 %v4586_v50, %v4756_v48 }
 0x290   :  { %v3795_v14 = vpop.eup %3794  ;;  %v3360_v16 = vpack.c.bf16 %v2932_v54, %v2931_v39  ;;  %v2826_v41 = vmul.f32 %v4770_v60, %v4770_v60  ;;  %v2871_v4 = vsub.f32 %v4598_v0, %v4762_v47  ;;  %v2873_v50 = vsub.f32 %v4610_v13, %v4770_v60 }
 0x291   :  { %v2909_v17 = vmul.f32 %v3795_v14, %v2861_v26  ;;  %v2910_v22 = vmul.f32 %v3795_v14, %v2862_v38  ;;  %v2884_v37 = vadd.f32 1e-05, %v2848_v35  ;;  %v2837_v55 = vsub.f32 %v2813_v63, %v2825_v1  ;;  %v2802_v59 = vpop.xlane.xlu1 %2801 }
 0x292   :  { %3024 = vst [vmem:[#allocation7 + $0x80] sm:$0xff] %v3360_v16  ;;  %v2814_v44 = vmul.f32 0.00390625, %v2802_v59  ;;  %v2872_v26 = vsub.f32 %v4600_v56, %v4762_v47  ;;  %v2874_v48 = vsub.f32 %v4612_v9, %v4770_v60 }
 0x293   :  { %v3797_v53 = vpop.eup %3796  ;;  %v2933_v19 = vmax.f32 %v2909_v17, 0.0  ;;  %v2934_v7 = vmax.f32 %v2910_v22, 0.0  ;;  %3802 = vrsqrt.f32 %v2884_v37  ;;  %v2849_v52 = vmax.f32 %v2837_v55, 0.0 }
 0x294   :  { %v2911_v45 = vmul.f32 %v3797_v53, %v2863_v18  ;;  %v2912_v6 = vmul.f32 %v3797_v53, %v2864_v42  ;;  %v2838_v25 = vsub.f32 %v2814_v44, %v2826_v41 }
 0x295   :  { %v3361_v10 = vpack.c.bf16 %v2934_v7, %v2933_v19  ;;  %v2885_v24 = vadd.f32 1e-05, %v2849_v52 }
 0x296   :  { %v2935_v57 = vmax.f32 %v2911_v45, 0.0  ;;  %v2936_v23 = vmax.f32 %v2912_v6, 0.0  ;;  %v2850_v29 = vmax.f32 %v2838_v25, 0.0 }
 0x297   :  { %3025 = vst [vmem:[#allocation7 + $0x88] sm:$0xff] %v3361_v10  ;;  %3804 = vrsqrt.f32 %v2885_v24 }
 0x298   :  { %v3799_v12 = vpop.eup %3798  ;;  %v3362_v11 = vpack.c.bf16 %v2936_v23, %v2935_v57  ;;  %v2886_v61 = vadd.f32 1e-05, %v2850_v29 }
 0x299   :  { %v2913_v31 = vmul.f32 %v3799_v12, %v2865_v51  ;;  %v2914_v20 = vmul.f32 %v3799_v12, %v2866_v33 }
 0x29a   :  { %3026 = vst [vmem:[#allocation7 + $0x90] sm:$0xff] %v3362_v11  ;;  %3806 = vrsqrt.f32 %v2886_v61 }
 0x29b   :  { %v3801_v27 = vpop.eup %3800  ;;  %v2937_v8 = vmax.f32 %v2913_v31, 0.0  ;;  %v2938_v58 = vmax.f32 %v2914_v20, 0.0 }
 0x29c   :  { %v2915_v46 = vmul.f32 %v3801_v27, %v2867_v21  ;;  %v2916_v36 = vmul.f32 %v3801_v27, %v2868_v30 }
 0x29d   :  { %v3363_v34 = vpack.c.bf16 %v2938_v58, %v2937_v8 }
 0x29e   :  { %v2939_v40 = vmax.f32 %v2915_v46, 0.0  ;;  %v2940_v62 = vmax.f32 %v2916_v36, 0.0 }
 0x29f   :  { %3027 = vst [vmem:[#allocation7 + $0x98] sm:$0xff] %v3363_v34 }
 0x2a0   :  { %v3803_v32 = vpop.eup %3802  ;;  %v3364_v15 = vpack.c.bf16 %v2940_v62, %v2939_v40 }
 0x2a1   :  { %v2917_v39 = vmul.f32 %v3803_v32, %v2869_v3  ;;  %v2918_v28 = vmul.f32 %v3803_v32, %v2870_v2 }
 0x2a2   :  { %3028 = vst [vmem:[#allocation7 + $0xa0] sm:$0xff] %v3364_v15 }
 0x2a3   :  { %v2941_v5 = vmax.f32 %v2917_v39, 0.0  ;;  %v2942_v54 = vmax.f32 %v2918_v28, 0.0 }
 0x2a4   :  { %v3805_v38 = vpop.eup %3804 }
 0x2a5   :  { %v3365_v35 = vpack.c.bf16 %v2942_v54, %v2941_v5  ;;  %v2919_v43 = vmul.f32 %v3805_v38, %v2871_v4  ;;  %v2920_v49 = vmul.f32 %v3805_v38, %v2872_v26 }
 0x2a7   :  { %3029 = vst [vmem:[#allocation7 + $0xa8] sm:$0xff] %v3365_v35  ;;  %v3807_v14 = vpop.eup %3806  ;;  %v2943_v16 = vmax.f32 %v2919_v43, 0.0  ;;  %v2944_v1 = vmax.f32 %v2920_v49, 0.0 }
 0x2a8   :  { %v2921_v63 = vmul.f32 %v3807_v14, %v2873_v50  ;;  %v2922_v17 = vmul.f32 %v3807_v14, %v2874_v48 }
 0x2a9   :  { %v3366_v0 = vpack.c.bf16 %v2944_v1, %v2943_v16 }
 0x2aa   :  { %v2945_v56 = vmax.f32 %v2921_v63, 0.0  ;;  %v2946_v47 = vmax.f32 %v2922_v17, 0.0 }
 0x2ab   :  { %3030 = vst [vmem:[#allocation7 + $0xb0] sm:$0xff] %v3366_v0 }
 0x2ac   :  { %v3367_v22 = vpack.c.bf16 %v2946_v47, %v2945_v56 }
 0x2ae   :  { %3031 = vst [vmem:[#allocation7 + $0xb8] sm:$0xff] %v3367_v22 }
 0x2af   :  { %3860 = shalt.err (!%p3857_p0)
}
 0x2b0   :  { %3043 = dma.vmem_to_hbm [thread:$0]  %s3038_s1, 3072, %s4808_s2, [#allocation4], %s3876_s12, %s3876_s12, %s3877_s13  }
 0x2b1   :  { %3873 = dma.done.wait [#allocation4], 3072  }
 0x2b2   :  { %3874 = vsyncadd [#allocation4], 4294964224 }
 0x2b3   :  { %3047 = vsyncpa [#allocation3], 1 }
 0x2b4   :  { %3048 = vsyncpa [#allocation6], 1 }
 0x2b5   :  { %3049 = vsyncpa [#allocation4], 1 }

</bundles_post_ra>
